<compile_context>
chip_gen: v5e
topology: v5e:2x2
jax: 0.10.0
libtpu: 0.0.40
codegen_flags: <defaults>
</compile_context>

<pallas_src>
import jax
import jax.numpy as jnp
from jax.experimental import pallas as pl
from jax.experimental.pallas import tpu as pltpu


def _round_up(n, m):
    return ((n + m - 1) // m) * m


def _num_tensorcores():
    """Best-effort TensorCores-per-device (2 on v7x, 1 on v5e/v6e).  Falls back
    to 1 (conservative: no tile split) if the query is unavailable."""
    try:
        info = pltpu.get_tpu_info()
        for attr in ("num_cores", "core_count", "tensorcore_count", "num_tensorcores"):
            n = getattr(info, attr, None)
            if isinstance(n, int) and n > 0:
                return n
    except Exception:
        pass
    try:
        if "v7" in jax.devices()[0].device_kind.lower():
            return 2
    except Exception:
        pass
    return 1


def mlp_kernel(x_ref, w1_ref, b1_ref, w2_ref, b2_ref, o_ref):
    # Linear(784 -> Hpad): bf16 operands straight from HBM, f32 MXU accumulation.
    h = jnp.dot(x_ref[...], w1_ref[...], preferred_element_type=jnp.float32)
    # bias + ReLU stay in f32 (v5e VPU has no bf16 path).
    h = jnp.maximum(h + b1_ref[...], 0.0)
    # Dropout(0.2): eval-mode identity (deterministic inference forward).
    # TODO(synk): train-mode dropout would use pltpu.prng_seed per grid step +
    # one pltpu.prng_random_bits((bm, H)) mask for the whole tile.
    # Linear(Hpad -> Cpad); padded rows/cols of W2 and cols of b2 are zero.
    out = jnp.dot(h.astype(w2_ref.dtype), w2_ref[...],
                  preferred_element_type=jnp.float32)
    # bf16 output store: lane-dense/unmasked and half the writeback bytes of
    # f32; the wrapper slices to (B, num_classes) and upcasts.
    o_ref[...] = (out + b2_ref[...]).astype(o_ref.dtype)


def prepare_params(w1, b1, w2, b2, *, weight_dtype=jnp.bfloat16):
    """One-time parameter prep (hoisted out of the forward per perf review):
    cast weights to bf16 and zero-pad hidden 300->384 / classes 10->128 so the
    matmul K/N dims and the output stores are lane-dense.  Call once at init
    and reuse the returned arrays for every forward."""
    input_size, hidden = w1.shape
    num_classes = w2.shape[1]
    H = _round_up(hidden, 128)       # 300 -> 384: clean K for the 2nd matmul
    C = _round_up(num_classes, 128)  # 10  -> 128: unmasked lane-dense stores

    w1_p = jnp.pad(w1.astype(weight_dtype), ((0, 0), (0, H - hidden)))
    b1_p = jnp.pad(jnp.asarray(b1, jnp.float32).reshape(1, -1),
                   ((0, 0), (0, H - hidden)))
    w2_p = jnp.pad(w2.astype(weight_dtype),
                   ((0, H - hidden), (0, C - num_classes)))
    b2_p = jnp.pad(jnp.asarray(b2, jnp.float32).reshape(1, -1),
                   ((0, 0), (0, C - num_classes)))
    # TODO(synk): on v7x, fp8(e4m3) weights with per-column scales folded into
    # the bias add would halve weight DMA again; kept bf16 for v5e/v6e portability.
    return (w1_p, b1_p, w2_p, b2_p), (input_size, hidden, num_classes, H, C)


def neural_net2_forward(x, padded_params, dims, *, bm=512):
    """x: (B, input_size) f32 or bf16; padded_params/dims from prepare_params()."""
    w1_p, b1_p, w2_p, b2_p = padded_params
    input_size, _hidden, num_classes, H, C = dims
    B, xf = x.shape
    assert xf == input_size

    # Feed x in bf16.  Ideally the caller's producer already emits bf16 so this
    # cast fuses upstream / is a no-op; even done here it halves the kernel's
    # dominant per-step DMA and the double-buffered x VMEM footprint.
    if x.dtype != jnp.bfloat16:
        x = x.astype(jnp.bfloat16)

    # --- batch tiling (multiples of 16 rows: bf16 packs 16 sublanes/vreg) ----
    bm_eff = min(bm, _round_up(B, 16))
    # Only split a single-step grid when the chip actually has 2 TensorCores
    # (v7x).  On 1-TC v5e/v6e the extra grid step is ~0.35 us pure overhead
    # plus a redundant bias/weight revisit with zero parallelism gain.
    if _num_tensorcores() >= 2 and pl.cdiv(B, bm_eff) < 2 and bm_eff >= 32:
        bm_eff = max(16, _round_up(bm_eff // 2, 16))
    B_pad = _round_up(B, bm_eff)
    if B_pad != B:
        x = jnp.pad(x, ((0, B_pad - B), (0, 0)))
    grid = (B_pad // bm_eff,)

    # Double-buffered VMEM estimate: bf16 x/out tiles + resident bf16 weights +
    # f32 biases.  With bf16 x this only nears v5e's 16 MiB default scoped-VMEM
    # limit for bm >= ~4096; raise the limit only then.
    # (W1/W2/b1/b2 have constant index_maps; pipeline_mode=pl.Buffered(1) could
    # reclaim their second buffer — left at the default for portability.)
    vmem_est = (2 * bm_eff * (input_size + C) * 2
                + 2 * (w1_p.size + w2_p.size) * 2
                + 2 * (b1_p.size + b2_p.size) * 4)
    vmem_limit = 32 * 1024 * 1024 if vmem_est > 12 * 1024 * 1024 else None

    flops = 2 * B_pad * input_size * H + 2 * B_pad * H * C
    bytes_accessed = (
        B_pad * input_size * 2            # x (bf16)
        + (w1_p.size + w2_p.size) * 2     # weights (bf16)
        + (b1_p.size + b2_p.size) * 4     # biases (f32)
        + B_pad * C * 2                   # output (bf16)
    )

    out = pl.pallas_call(
        mlp_kernel,
        out_shape=jax.ShapeDtypeStruct((B_pad, C), jnp.bfloat16),
        grid_spec=pltpu.PrefetchScalarGridSpec(
            num_scalar_prefetch=0,
            grid=grid,
            in_specs=[
                pl.BlockSpec((bm_eff, input_size), lambda i: (i, 0)),  # x tile
                pl.BlockSpec((input_size, H), lambda i: (0, 0)),       # W1 (resident)
                pl.BlockSpec((1, H), lambda i: (0, 0)),                # b1
                pl.BlockSpec((H, C), lambda i: (0, 0)),                # W2 (resident)
                pl.BlockSpec((1, C), lambda i: (0, 0)),                # b2
            ],
            out_specs=pl.BlockSpec((bm_eff, C), lambda i: (i, 0)),
        ),
        compiler_params=pltpu.CompilerParams(
            dimension_semantics=("parallel",),
            vmem_limit_bytes=vmem_limit,
        ),
        cost_estimate=pl.CostEstimate(
            flops=flops, transcendentals=0, bytes_accessed=bytes_accessed),
    )(x, w1_p, b1_p, w2_p, b2_p)

    # Slice away batch padding and padded class columns; return f32 logits.
    return out[:B, :num_classes].astype(jnp.float32)


def init_params(key, input_size=784, hidden_size=300, num_classes=10):
    # Deterministic init mimicking PyTorch nn.Linear default
    # (uniform(-1/sqrt(fan_in), 1/sqrt(fan_in))).  Stored as (in, out) so the
    # kernel computes x @ W.
    k1, k2, k3, k4 = jax.random.split(key, 4)
    bound1 = 1.0 / jnp.sqrt(jnp.float32(input_size))
    bound2 = 1.0 / jnp.sqrt(jnp.float32(hidden_size))
    w1 = jax.random.uniform(k1, (input_size, hidden_size), jnp.float32, -bound1, bound1)
    b1 = jax.random.uniform(k2, (1, hidden_size), jnp.float32, -bound1, bound1)
    w2 = jax.random.uniform(k3, (hidden_size, num_classes), jnp.float32, -bound2, bound2)
    b2 = jax.random.uniform(k4, (1, num_classes), jnp.float32, -bound2, bound2)
    return w1, b1, w2, b2


if __name__ == "__main__":
    key = jax.random.PRNGKey(0)
    kx, kp = jax.random.split(key)

    batch = 32
    input_size, hidden_size, num_classes = 784, 300, 10

    x = jax.random.normal(kx, (batch, input_size), jnp.float32)
    w1, b1, w2, b2 = init_params(kp, input_size, hidden_size, num_classes)

    # One-time param prep (pad + bf16 cast), reused across all forwards.
    padded_params, dims = prepare_params(w1, b1, w2, b2)

    out = neural_net2_forward(x, padded_params, dims)  # default bm=512, auto-clamped
    jax.block_until_ready(out)

    # Reference with the identical precision policy (bf16 dot operands, f32
    # accumulation, f32 bias+ReLU, bf16 final store); dropout eval = identity.
    xb = x.astype(jnp.bfloat16)
    w1b = w1.astype(jnp.bfloat16)
    w2b = w2.astype(jnp.bfloat16)
    h = jnp.maximum(
        jnp.dot(xb, w1b, preferred_element_type=jnp.float32) + b1.reshape(1, -1), 0.0)
    ref = jnp.dot(h.astype(jnp.bfloat16), w2b,
                  preferred_element_type=jnp.float32) + b2.reshape(1, -1)
    ref = ref.astype(jnp.bfloat16).astype(jnp.float32)

    assert out.shape == (batch, num_classes)
    assert out.dtype == jnp.float32
    assert jnp.allclose(out, ref, atol=2e-2, rtol=2e-2), float(jnp.max(jnp.abs(out - ref)))

    print("KERNEL_OK")
</pallas_src>

<mosaic_0001>
module attributes {stable_mosaic.version = 11 : i64} {
  func.func @mlp_kernel(%arg0: i32, %arg1: memref<32x784xbf16, #tpu.memory_space<vmem>>, %arg2: memref<784x384xbf16, #tpu.memory_space<vmem>>, %arg3: memref<1x384xf32, #tpu.memory_space<vmem>>, %arg4: memref<384x128xbf16, #tpu.memory_space<vmem>>, %arg5: memref<1x128xf32, #tpu.memory_space<vmem>>, %arg6: memref<32x128xbf16, #tpu.memory_space<vmem>>) attributes {dimension_semantics = [#tpu.dimension_semantics<parallel>], iteration_bounds = array<i64: 1>, scalar_prefetch = 0 : i64, scratch_operands = 0 : i64, tpu.core_type = #tpu.core_type<tc>, window_params = [{transform_indices = @transform_0, window_bounds = array<i64: 32, 784>}, {pipeline_mode = #tpu.pipeline_mode<synchronous>, transform_indices = @transform_1, window_bounds = array<i64: 784, 384>}, {pipeline_mode = #tpu.pipeline_mode<synchronous>, transform_indices = @transform_2, window_bounds = array<i64: 1, 384>}, {pipeline_mode = #tpu.pipeline_mode<synchronous>, transform_indices = @transform_3, window_bounds = array<i64: 384, 128>}, {pipeline_mode = #tpu.pipeline_mode<synchronous>, transform_indices = @transform_4, window_bounds = array<i64: 1, 128>}, {transform_indices = @transform_5, window_bounds = array<i64: 32, 128>}]} {
    %c0 = arith.constant 0 : index
    %c0_0 = arith.constant 0 : index
    %0 = vector.load %arg1[%c0, %c0_0] : memref<32x784xbf16, #tpu.memory_space<vmem>>, vector<32x784xbf16>
    %c0_1 = arith.constant 0 : index
    %c0_2 = arith.constant 0 : index
    %1 = vector.load %arg2[%c0_1, %c0_2] : memref<784x384xbf16, #tpu.memory_space<vmem>>, vector<784x384xbf16>
    %cst = arith.constant dense<0.000000e+00> : vector<32x384xf32>
    %2 = tpu.matmul %0, %1, %cst {dimension_numbers = #tpu.dot_dimension_numbers<[1], [0], [0], [1], [0, 0, 1, 1], [], []>} : vector<32x784xbf16>, vector<784x384xbf16>, vector<32x384xf32> -> vector<32x384xf32>
    %c0_3 = arith.constant 0 : index
    %c0_4 = arith.constant 0 : index
    %3 = vector.load %arg3[%c0_3, %c0_4] : memref<1x384xf32, #tpu.memory_space<vmem>>, vector<1x384xf32>
    %4 = vector.broadcast %3 : vector<1x384xf32> to vector<32x384xf32>
    %5 = arith.addf %2, %4 : vector<32x384xf32>
    %cst_5 = arith.constant 0.000000e+00 : f32
    %6 = vector.broadcast %cst_5 : f32 to vector<32x384xf32>
    %7 = arith.maximumf %5, %6 : vector<32x384xf32>
    %8 = arith.truncf %7 : vector<32x384xf32> to vector<32x384xbf16>
    %c0_6 = arith.constant 0 : index
    %c0_7 = arith.constant 0 : index
    %9 = vector.load %arg4[%c0_6, %c0_7] : memref<384x128xbf16, #tpu.memory_space<vmem>>, vector<384x128xbf16>
    %cst_8 = arith.constant dense<0.000000e+00> : vector<32x128xf32>
    %10 = tpu.matmul %8, %9, %cst_8 {dimension_numbers = #tpu.dot_dimension_numbers<[1], [0], [0], [1], [0, 0, 1, 1], [], []>} : vector<32x384xbf16>, vector<384x128xbf16>, vector<32x128xf32> -> vector<32x128xf32>
    %c0_9 = arith.constant 0 : index
    %c0_10 = arith.constant 0 : index
    %11 = vector.load %arg5[%c0_9, %c0_10] : memref<1x128xf32, #tpu.memory_space<vmem>>, vector<1x128xf32>
    %12 = vector.broadcast %11 : vector<1x128xf32> to vector<32x128xf32>
    %13 = arith.addf %10, %12 : vector<32x128xf32>
    %14 = arith.truncf %13 : vector<32x128xf32> to vector<32x128xbf16>
    %c0_11 = arith.constant 0 : index
    %c0_12 = arith.constant 0 : index
    %15 = vector.load %arg6[%c0_11, %c0_12] : memref<32x128xbf16, #tpu.memory_space<vmem>>, vector<32x128xbf16>
    tpu.vector_store %arg6[%c0_11, %c0_12], %14 {strides = array<i32>} : memref<32x128xbf16, #tpu.memory_space<vmem>>, vector<32x128xbf16>,
    return
  }
  func.func @transform_0(%arg0: i32) -> (i32, i32) {
    %c0_i32 = arith.constant 0 : i32
    %c0_i32_0 = arith.constant 0 : i32
    return %arg0, %c0_i32 : i32, i32
  }
  func.func @transform_1(%arg0: i32) -> (i32, i32) {
    %c0_i32 = arith.constant 0 : i32
    %c0_i32_0 = arith.constant 0 : i32
    %c0_i32_1 = arith.constant 0 : i32
    return %c0_i32, %c0_i32_0 : i32, i32
  }
  func.func @transform_2(%arg0: i32) -> (i32, i32) {
    %c0_i32 = arith.constant 0 : i32
    %c0_i32_0 = arith.constant 0 : i32
    %c0_i32_1 = arith.constant 0 : i32
    return %c0_i32, %c0_i32_0 : i32, i32
  }
  func.func @transform_3(%arg0: i32) -> (i32, i32) {
    %c0_i32 = arith.constant 0 : i32
    %c0_i32_0 = arith.constant 0 : i32
    %c0_i32_1 = arith.constant 0 : i32
    return %c0_i32, %c0_i32_0 : i32, i32
  }
  func.func @transform_4(%arg0: i32) -> (i32, i32) {
    %c0_i32 = arith.constant 0 : i32
    %c0_i32_0 = arith.constant 0 : i32
    %c0_i32_1 = arith.constant 0 : i32
    return %c0_i32, %c0_i32_0 : i32, i32
  }
  func.func @transform_5(%arg0: i32) -> (i32, i32) {
    %c0_i32 = arith.constant 0 : i32
    %c0_i32_0 = arith.constant 0 : i32
    return %arg0, %c0_i32 : i32, i32
  }
}

</mosaic_0001>

<bundles_post_ra>
// kernel: tpu_custom_call.1
= control target key start
LH: loop header
LB: loop body
LE: loop exit
PB: predicated region body
PF: predicated region fallthrough
CT: control target
= control target key end

     0   :  { %10 = vsyncpa [#allocation3], 0  ;;  %s3094_s0 = inlined_call_operand.hbm [shape: bf16[32,784], index: 0, kind: input, shape index: {}]   ;;  %s3095_s1 = inlined_call_operand.hbm [shape: bf16[784,384], index: 1, kind: input, shape index: {}]   ;;  %s3096_s2 = inlined_call_operand.hbm [shape: f32[1,384], index: 2, kind: input, shape index: {}]   ;;  %s3097_s3 = inlined_call_operand.hbm [shape: bf16[384,128], index: 3, kind: input, shape index: {}]   ;;  %s3098_s4 = inlined_call_operand.vmem [shape: f32[1,128], index: 4, kind: input, shape index: {}]   ;;  %s3099_s5 = inlined_call_operand.hbm [shape: bf16[32,128], index: 5, kind: output, shape index: {}]  }
   0x1   :  { %11 = vsyncpa [#allocation6], 0 }
   0x2   :  { %12 = vsyncpa [#allocation9], 0  ;;  %s31_s20 = sshll.u32 %s3095_s1, 4  ;;  %s32_s20 = int_to_ptr.hbm [resolvable:$true] %s31_s20 }
   0x3   :  { %13 = vsyncpa [#allocation4], 0  ;;  %s2945_s21 = smov [#allocation5]   ;;  %s18_s25 = sshll.u32 %s3094_s0, 4  ;;  %s19_s25 = int_to_ptr.hbm [resolvable:$true] %s18_s25 }
   0x4   :  { %s33_s22 = sshll.u32 %s2945_s21, 4  ;;  %s2946_s26 = smov 192   ;;  %s34_s22 = int_to_ptr.vmem [resolvable:$true] %s33_s22 }
   0x5   :  { %s2947_s27 = smov 12   ;;  %s2948_s28 = smov [#allocation2]  }
   0x6   :  { %39 = dma.hbm_to_vmem [thread:$0]  %s32_s20, 18816, %s34_s22, [#allocation6], %s2946_s26, %s2946_s26, %s2947_s27  }
   0x7   :  { %s20_s29 = sshll.u32 %s2948_s28, 4  ;;  %s2949_s30 = smov 448   ;;  %s21_s29 = int_to_ptr.vmem [resolvable:$true] %s20_s29 }
   0x8   :  { %s2950_s6 = smov 28   ;;  %s45_s8 = sshll.u32 %s3096_s2, 4  ;;  %s46_s8 = int_to_ptr.hbm [resolvable:$true] %s45_s8 }
   0x9   :  { %26 = dma.hbm_to_vmem [thread:$0]  %s19_s25, 1792, %s21_s29, [#allocation3], %s2949_s30, %s2949_s30, %s2950_s6  }
   0xa   :  { %s2951_s9 = smov [#allocation7]   ;;  %s55_s12 = sshll.u32 %s3097_s3, 4  ;;  %s56_s12 = int_to_ptr.hbm [resolvable:$true] %s55_s12 }
   0xb   :  { %s47_s10 = sshll.u32 %s2951_s9, 4  ;;  %s2952_s13 = smov [#allocation8]   ;;  %s48_s10 = int_to_ptr.vmem [resolvable:$true] %s47_s10 }
   0xc   :  { %50 = dma.hbm_to_vmem [thread:$0]  %s46_s8, 48, %s48_s10, [#allocation6]  }
   0xd   :  { %s57_s14 = sshll.u32 %s2952_s13, 4  ;;  %s2953_s15 = smov 64   ;;  %s58_s14 = int_to_ptr.vmem [resolvable:$true] %s57_s14 }
   0xe   :  { %s2954_s16 = smov 4  }
   0xf   :  { %63 = dma.hbm_to_vmem [thread:$0]  %s56_s12, 3072, %s58_s14, [#allocation9], %s2953_s15, %s2953_s15, %s2954_s16  }
  0x10   :  { %2937 = dma.done.wait [#allocation3], 1792  }
  0x11   :  { %2938 = vsyncadd [#allocation3], 4294965504 }
  0x12   :  { %2939 = dma.done.wait [#allocation6], 18864  }
  0x13   :  { %2940 = vsyncadd [#allocation6], 4294948432 }
  0x14   :  { %2941 = dma.done.wait [#allocation9], 3072  }
  0x15   :  { %2942 = vsyncadd [#allocation9], 4294964224  ;;  %v2005_v0 = vld [vmem:[#allocation5 + $0xa8] sm:$0xf]  ;;  %v2645_v1 = vld [vmem:[#allocation5 + $0xb0] sm:$0xf0] }
  0x16   :  { %v2197_v2 = vld [vmem:[#allocation5 + $0x228] sm:$0xf]  ;;  %v2006_v3 = vor.u32 %v2645_v1, %v2005_v0  ;;  %v2693_v4 = vld [vmem:[#allocation5 + $0x230] sm:$0xf0]  ;;  %v1993_v11 = vld [vmem:[#allocation5 + $0x90] sm:$0xf] }
  0x17   :  { %v2101_v5 = vld [vmem:[#allocation5 + $0x168] sm:$0xf]  ;;  %v2669_v6 = vld [vmem:[#allocation5 + $0x170] sm:$0xf0]  ;;  %v2198_v7 = vor.u32 %v2693_v4, %v2197_v2  ;;  %v2642_v13 = vld [vmem:[#allocation5 + $0x98] sm:$0xf0] }
  0x18   :  { %v2102_v8 = vor.u32 %v2669_v6, %v2101_v5  ;;  %v2293_v9 = vld [vmem:[#allocation5 + $0x2e8] sm:$0xf]  ;;  %v2717_v10 = vld [vmem:[#allocation5 + $0x2f0] sm:$0xf0]  ;;  %1164 = vmatpush.bf16.msra.mxu0 %v2006_v3  ;;  %v2185_v14 = vld [vmem:[#allocation5 + $0x210] sm:$0xf]  ;;  %v1994_v16 = vor.u32 %v2642_v13, %v1993_v11 }
  0x19   :  { %v2294_v12 = vor.u32 %v2717_v10, %v2293_v9  ;;  %v2690_v15 = vld [vmem:[#allocation5 + $0x218] sm:$0xf0]  ;;  %1202 = vmatpush.bf16.msra.mxu2 %v2198_v7  ;;  %v2089_v18 = vld [vmem:[#allocation5 + $0x150] sm:$0xf]  ;;  %v1981_v23 = vld [vmem:[#allocation5 + $0x78] sm:$0xf] }
  0x1a   :  { %1183 = vmatpush.bf16.msra.mxu1 %v2102_v8  ;;  %v2186_v17 = vor.u32 %v2690_v15, %v2185_v14  ;;  %v2666_v19 = vld [vmem:[#allocation5 + $0x158] sm:$0xf0]  ;;  %v2281_v20 = vld [vmem:[#allocation5 + $0x2d0] sm:$0xf]  ;;  %v2639_v24 = vld [vmem:[#allocation5 + $0x80] sm:$0xf0] }
  0x1b   :  { %1221 = vmatpush.bf16.msra.mxu3 %v2294_v12  ;;  %v2090_v21 = vor.u32 %v2666_v19, %v2089_v18  ;;  %v2714_v22 = vld [vmem:[#allocation5 + $0x2d8] sm:$0xf0]  ;;  %v2173_v26 = vld [vmem:[#allocation5 + $0x1f8] sm:$0xf]  ;;  %v2687_v27 = vld [vmem:[#allocation5 + $0x200] sm:$0xf0]  ;;  %v1982_v29 = vor.u32 %v2639_v24, %v1981_v23 }
  0x1c   :  { %v2282_v25 = vor.u32 %v2714_v22, %v2281_v20  ;;  %v2077_v28 = vld [vmem:[#allocation5 + $0x138] sm:$0xf]  ;;  %1165 = vmatpush.bf16.msra.mxu0 %v1994_v16  ;;  %v2663_v30 = vld [vmem:[#allocation5 + $0x140] sm:$0xf0]  ;;  %v2174_v33 = vor.u32 %v2687_v27, %v2173_v26  ;;  %v1969_v35 = vld [vmem:[#allocation5 + $0x60] sm:$0xf] }
  0x1d   :  { %v2269_v31 = vld [vmem:[#allocation5 + $0x2b8] sm:$0xf]  ;;  %v2711_v32 = vld [vmem:[#allocation5 + $0x2c0] sm:$0xf0]  ;;  %1203 = vmatpush.bf16.msra.mxu2 %v2186_v17  ;;  %v2078_v34 = vor.u32 %v2663_v30, %v2077_v28  ;;  %v2636_v36 = vld [vmem:[#allocation5 + $0x68] sm:$0xf0] }
  0x1e   :  { %1184 = vmatpush.bf16.msra.mxu1 %v2090_v21  ;;  %v2161_v37 = vld [vmem:[#allocation5 + $0x1e0] sm:$0xf]  ;;  %v2270_v38 = vor.u32 %v2711_v32, %v2269_v31  ;;  %v2684_v39 = vld [vmem:[#allocation5 + $0x1e8] sm:$0xf0]  ;;  %v1970_v44 = vor.u32 %v2636_v36, %v1969_v35  ;;  %v1957_v47 = vld [vmem:[#allocation5 + $0x48] sm:$0xf] }
  0x1f   :  { %1222 = vmatpush.bf16.msra.mxu3 %v2282_v25  ;;  %v2065_v40 = vld [vmem:[#allocation5 + $0x120] sm:$0xf]  ;;  %v2660_v41 = vld [vmem:[#allocation5 + $0x128] sm:$0xf0]  ;;  %v2162_v45 = vor.u32 %v2684_v39, %v2161_v37  ;;  %v2633_v48 = vld [vmem:[#allocation5 + $0x50] sm:$0xf0] }
  0x20   :  { %v2257_v42 = vld [vmem:[#allocation5 + $0x2a0] sm:$0xf]  ;;  %v2708_v43 = vld [vmem:[#allocation5 + $0x2a8] sm:$0xf0]  ;;  %1166 = vmatpush.bf16.msra.mxu0 %v1982_v29  ;;  %v2066_v46 = vor.u32 %v2660_v41, %v2065_v40  ;;  %v2149_v49 = vld [vmem:[#allocation5 + $0x1c8] sm:$0xf]  ;;  %v1958_v56 = vor.u32 %v2633_v48, %v1957_v47 }
  0x21   :  { %1204 = vmatpush.bf16.msra.mxu2 %v2174_v33  ;;  %v2258_v50 = vor.u32 %v2708_v43, %v2257_v42  ;;  %v2681_v51 = vld [vmem:[#allocation5 + $0x1d0] sm:$0xf0]  ;;  %v2053_v52 = vld [vmem:[#allocation5 + $0x108] sm:$0xf]  ;;  %v1945_v59 = vld [vmem:[#allocation5 + $0x30] sm:$0xf] }
  0x22   :  { %1185 = vmatpush.bf16.msra.mxu1 %v2078_v34  ;;  %v2657_v53 = vld [vmem:[#allocation5 + $0x110] sm:$0xf0]  ;;  %v2245_v54 = vld [vmem:[#allocation5 + $0x288] sm:$0xf]  ;;  %v2150_v57 = vor.u32 %v2681_v51, %v2149_v49  ;;  %v2630_v60 = vld [vmem:[#allocation5 + $0x38] sm:$0xf0] }
  0x23   :  { %1223 = vmatpush.bf16.msra.mxu3 %v2270_v38  ;;  %v2705_v55 = vld [vmem:[#allocation5 + $0x290] sm:$0xf0]  ;;  %v2054_v58 = vor.u32 %v2657_v53, %v2053_v52  ;;  %v2137_v61 = vld [vmem:[#allocation5 + $0x1b0] sm:$0xf]  ;;  %v2678_v63 = vld [vmem:[#allocation5 + $0x1b8] sm:$0xf0]  ;;  %v1946_v4 = vor.u32 %v2630_v60, %v1945_v59 }
  0x24   :  { %1167 = vmatpush.bf16.msra.mxu0 %v1970_v44  ;;  %v2246_v62 = vor.u32 %v2705_v55, %v2245_v54  ;;  %v2041_v0 = vld [vmem:[#allocation5 + $0xf0] sm:$0xf]  ;;  %v2654_v1 = vld [vmem:[#allocation5 + $0xf8] sm:$0xf0]  ;;  %v2138_v5 = vor.u32 %v2678_v63, %v2137_v61  ;;  %v1933_v7 = vld [vmem:[#allocation5 + $0x18] sm:$0xf] }
  0x25   :  { %1205 = vmatpush.bf16.msra.mxu2 %v2162_v45  ;;  %v2233_v2 = vld [vmem:[#allocation5 + $0x270] sm:$0xf]  ;;  %v2702_v3 = vld [vmem:[#allocation5 + $0x278] sm:$0xf0]  ;;  %v2042_v6 = vor.u32 %v2654_v1, %v2041_v0  ;;  %v2627_v8 = vld [vmem:[#allocation5 + $0x20] sm:$0xf0] }
  0x26   :  { %1186 = vmatpush.bf16.msra.mxu1 %v2066_v46  ;;  %v2125_v9 = vld [vmem:[#allocation5 + $0x198] sm:$0xf]  ;;  %v2234_v10 = vor.u32 %v2702_v3, %v2233_v2  ;;  %v2675_v11 = vld [vmem:[#allocation5 + $0x1a0] sm:$0xf0]  ;;  %v1934_v16 = vor.u32 %v2627_v8, %v1933_v7  ;;  %v1921_v17 = vld [vmem:[#allocation5] sm:$0xf] }
  0x27   :  { %1224 = vmatpush.bf16.msra.mxu3 %v2258_v50  ;;  %v2029_v12 = vld [vmem:[#allocation5 + $0xd8] sm:$0xf]  ;;  %v2651_v13 = vld [vmem:[#allocation5 + $0xe0] sm:$0xf0]  ;;  %v2624_v18 = vld [vmem:[#allocation5 + $0x8] sm:$0xf0]  ;;  %v2126_v20 = vor.u32 %v2675_v11, %v2125_v9 }
  0x28   :  { %1168 = vmatpush.bf16.msra.mxu0 %v1958_v56  ;;  %v2221_v14 = vld [vmem:[#allocation5 + $0x258] sm:$0xf]  ;;  %v2699_v15 = vld [vmem:[#allocation5 + $0x260] sm:$0xf0]  ;;  %v2113_v19 = vld [vmem:[#allocation5 + $0x180] sm:$0xf]  ;;  %v2030_v21 = vor.u32 %v2651_v13, %v2029_v12  ;;  %v1922_v32 = vor.u32 %v2624_v18, %v1921_v17 }
  0x29   :  { %1206 = vmatpush.bf16.msra.mxu2 %v2150_v57  ;;  %v2672_v22 = vld [vmem:[#allocation5 + $0x188] sm:$0xf0]  ;;  %v2017_v23 = vld [vmem:[#allocation5 + $0xc0] sm:$0xf]  ;;  %v2222_v25 = vor.u32 %v2699_v15, %v2221_v14  ;;  %v1865_v28 = vld [vmem:[#allocation2] sm:$0xf] }
  0x2a   :  { %1187 = vmatpush.bf16.msra.mxu1 %v2054_v58  ;;  %v2648_v24 = vld [vmem:[#allocation5 + $0xc8] sm:$0xf0]  ;;  %v2209_v26 = vld [vmem:[#allocation5 + $0x240] sm:$0xf]  ;;  %v2389_v30 = vld [vmem:[#allocation5 + $0x3a8] sm:$0xf]  ;;  %v2114_v36 = vor.u32 %v2672_v22, %v2113_v19 }
  0x2b   :  { %1225 = vmatpush.bf16.msra.mxu3 %v2246_v62  ;;  %v2696_v27 = vld [vmem:[#allocation5 + $0x248] sm:$0xf0]  ;;  %v2741_v31 = vld [vmem:[#allocation5 + $0x3b0] sm:$0xf0]  ;;  %v1873_v33 = vld [vmem:[#allocation2 + $0x8] sm:$0xf]  ;;  %v2018_v37 = vor.u32 %v2648_v24, %v2017_v23 }
  0x2c   :  { %1169 = vmatpush.bf16.msra.mxu0 %v1946_v4  ;;  %v2612_v29 = vld [vmem:[#allocation2 + $0x18] sm:$0xf0]  ;;  %v2485_v34 = vld [vmem:[#allocation5 + $0x468] sm:$0xf]  ;;  %v2765_v35 = vld [vmem:[#allocation5 + $0x470] sm:$0xf0]  ;;  %v2210_v41 = vor.u32 %v2696_v27, %v2209_v26  ;;  %v2390_v42 = vor.u32 %v2741_v31, %v2389_v30 }
  0x2d   :  { %1207 = vmatpush.bf16.msra.mxu2 %v2138_v5  ;;  %v2613_v38 = vld [vmem:[#allocation2 + $0x20] sm:$0xf0]  ;;  %v1867_v40 = vld [vmem:[#allocation2 + $0x1c] sm:$0xf0]  ;;  %v2610_v43 = vld [vmem:[#allocation2 + $0xc] sm:$0xf]  ;;  %v3001_v46 = vor.u32 %v2612_v29, %v1865_v28  ;;  %v2486_v47 = vor.u32 %v2765_v35, %v2485_v34 }
  0x2e   :  { %1188 = vmatpush.bf16.msra.mxu1 %v2042_v6  ;;  %v2609_v39 = vld [vmem:[#allocation2 + $0x4] sm:$0xf]  ;;  %v1875_v44 = vld [vmem:[#allocation2 + $0x24] sm:$0xf0]  ;;  %v2644_v45 = vld [vmem:[#allocation5 + $0xac] sm:$0xf]  ;;  %v3003_v51 = vor.u32 %v2613_v38, %v1873_v33 }
  0x2f   :  { %1226 = vmatpush.bf16.msra.mxu3 %v2234_v10  ;;  %v2007_v48 = vld [vmem:[#allocation5 + $0xb4] sm:$0xf0]  ;;  %v2377_v49 = vld [vmem:[#allocation5 + $0x390] sm:$0xf]  ;;  %v2738_v50 = vld [vmem:[#allocation5 + $0x398] sm:$0xf0]  ;;  %v3005_v52 = vor.u32 %v2609_v39, %v1867_v40  ;;  %v3007_v55 = vor.u32 %v2610_v43, %v1875_v44 }
  0x30   :  { %1170 = vmatpush.bf16.msra.mxu0 %v1934_v16  ;;  %v2473_v53 = vld [vmem:[#allocation5 + $0x450] sm:$0xf]  ;;  %v2762_v54 = vld [vmem:[#allocation5 + $0x458] sm:$0xf0]  ;;  %v2010_v56 = vor.u32 %v2644_v45, %v2007_v48  ;;  %v2378_v57 = vor.u32 %v2738_v50, %v2377_v49  ;;  %v2641_v58 = vld [vmem:[#allocation5 + $0x94] sm:$0xf] }
  0x31   :  { %1208 = vmatpush.bf16.msra.mxu2 %v2126_v20  ;;  %v2474_v59 = vor.u32 %v2762_v54, %v2473_v53  ;;  %v1995_v60 = vld [vmem:[#allocation5 + $0x9c] sm:$0xf0]  ;;  %v2365_v61 = vld [vmem:[#allocation5 + $0x378] sm:$0xf]  ;;  %v2735_v62 = vld [vmem:[#allocation5 + $0x380] sm:$0xf0] }
  0x32   :  { %1189 = vmatpush.bf16.msra.mxu1 %v2030_v21  ;;  %v2461_v63 = vld [vmem:[#allocation5 + $0x438] sm:$0xf]  ;;  %v2759_v0 = vld [vmem:[#allocation5 + $0x440] sm:$0xf0]  ;;  %v1998_v1 = vor.u32 %v2641_v58, %v1995_v60  ;;  %v2366_v2 = vor.u32 %v2735_v62, %v2365_v61  ;;  %v2638_v3 = vld [vmem:[#allocation5 + $0x7c] sm:$0xf] }
  0x33   :  { %1227 = vmatpush.bf16.msra.mxu3 %v2222_v25  ;;  %v2497_v4 = vld [vmem:[#allocation5 + $0x480] sm:$0xf]  ;;  %v2768_v5 = vld [vmem:[#allocation5 + $0x488] sm:$0xf0]  ;;  %v2462_v6 = vor.u32 %v2759_v0, %v2461_v63  ;;  %v1983_v7 = vld [vmem:[#allocation5 + $0x84] sm:$0xf0] }
  0x34   :  { %1171 = vmatpush.bf16.msra.mxu0 %v1922_v32  ;;  %v2353_v8 = vld [vmem:[#allocation5 + $0x360] sm:$0xf]  ;;  %v2732_v9 = vld [vmem:[#allocation5 + $0x368] sm:$0xf0]  ;;  %v2498_v10 = vor.u32 %v2768_v5, %v2497_v4  ;;  %v2635_v13 = vld [vmem:[#allocation5 + $0x64] sm:$0xf]  ;;  %v1986_v14 = vor.u32 %v2638_v3, %v1983_v7 }
  0x35   :  { %1209 = vmatpush.bf16.msra.mxu2 %v2114_v36  ;;  %v2449_v11 = vld [vmem:[#allocation5 + $0x420] sm:$0xf]  ;;  %v2756_v12 = vld [vmem:[#allocation5 + $0x428] sm:$0xf0]  ;;  %v2354_v15 = vor.u32 %v2732_v9, %v2353_v8  ;;  %v1971_v16 = vld [vmem:[#allocation5 + $0x6c] sm:$0xf0] }
  0x36   :  { %1190 = vmatpush.bf16.msra.mxu1 %v2018_v37  ;;  %v1893_v17 = vld [vmem:[#allocation2 + $0x38] sm:$0xf]  ;;  %v2619_v18 = vld [vmem:[#allocation2 + $0x50] sm:$0xf0]  ;;  %v2450_v19 = vor.u32 %v2756_v12, %v2449_v11  ;;  %v1901_v20 = vld [vmem:[#allocation2 + $0x40] sm:$0xf]  ;;  %v1974_v30 = vor.u32 %v2635_v13, %v1971_v16 }
  0x37   :  { %1228 = vmatpush.bf16.msra.mxu3 %v2210_v41  ;;  %1172 = vmatmul.bf16.vlgmr.msra.gmra.mxu0 %v3001_v46  ;;  %v2620_v21 = vld [vmem:[#allocation2 + $0x58] sm:$0xf0]  ;;  %v2341_v22 = vld [vmem:[#allocation5 + $0x348] sm:$0xf]  ;;  %v2729_v23 = vld [vmem:[#allocation5 + $0x350] sm:$0xf0]  ;;  %v3013_v35 = vor.u32 %v2619_v18, %v1893_v17 }
  0x38   :  { %1240 = vmatpush.bf16.msrb.mxu0 %v2390_v42  ;;  %1210 = vmatmul.bf16.vlgmr.msra.gmra.mxu2 %v3003_v51  ;;  %v2616_v24 = vld [vmem:[#allocation2 + $0x3c] sm:$0xf]  ;;  %v2437_v25 = vld [vmem:[#allocation5 + $0x408] sm:$0xf]  ;;  %v2753_v26 = vld [vmem:[#allocation5 + $0x410] sm:$0xf0]  ;;  %v2342_v31 = vor.u32 %v2729_v23, %v2341_v22  ;;  %v3015_v40 = vor.u32 %v2620_v21, %v1901_v20 }
  0x39   :  { %1191 = vmatmul.bf16.vlgmr.msra.gmra.mxu1 %v3005_v52  ;;  %1285 = vmatpush.bf16.msrb.mxu2 %v2498_v10  ;;  %v1895_v27 = vld [vmem:[#allocation2 + $0x54] sm:$0xf0]  ;;  %v2617_v28 = vld [vmem:[#allocation2 + $0x44] sm:$0xf]  ;;  %v1903_v29 = vld [vmem:[#allocation2 + $0x5c] sm:$0xf0]  ;;  %v2438_v36 = vor.u32 %v2753_v26, %v2437_v25 }
  0x3a   :  { %1259 = vmatpush.bf16.msrb.mxu1 %v2486_v47  ;;  %1229 = vmatmul.bf16.vlgmr.msra.gmra.mxu3 %v3007_v55  ;;  %v2632_v32 = vld [vmem:[#allocation5 + $0x4c] sm:$0xf]  ;;  %v1959_v33 = vld [vmem:[#allocation5 + $0x54] sm:$0xf0]  ;;  %v2329_v37 = vld [vmem:[#allocation5 + $0x330] sm:$0xf]  ;;  %v3017_v41 = vor.u32 %v2616_v24, %v1895_v27  ;;  %v3019_v44 = vor.u32 %v2617_v28, %v1903_v29 }
  0x3b   :  { %1297 = vmatpush.bf16.msrb.mxu3 %v2010_v56  ;;  %v2716_v34 = vld [vmem:[#allocation5 + $0x2ec] sm:$0xf]  ;;  %v2726_v38 = vld [vmem:[#allocation5 + $0x338] sm:$0xf0]  ;;  %v2295_v39 = vld [vmem:[#allocation5 + $0x2f4] sm:$0xf0]  ;;  %v1962_v47 = vor.u32 %v2632_v32, %v1959_v33 }
  0x3c   :  { %1241 = vmatpush.bf16.msrb.mxu0 %v2378_v57  ;;  %v2425_v42 = vld [vmem:[#allocation5 + $0x3f0] sm:$0xf]  ;;  %v2750_v43 = vld [vmem:[#allocation5 + $0x3f8] sm:$0xf0]  ;;  %v2298_v45 = vor.u32 %v2716_v34, %v2295_v39  ;;  %v2330_v48 = vor.u32 %v2726_v38, %v2329_v37  ;;  %v2629_v49 = vld [vmem:[#allocation5 + $0x34] sm:$0xf] }
  0x3d   :  { %v2713_v50 = vld [vmem:[#allocation5 + $0x2d4] sm:$0xf]  ;;  %v2283_v53 = vld [vmem:[#allocation5 + $0x2dc] sm:$0xf0]  ;;  %v2426_v54 = vor.u32 %v2750_v43, %v2425_v42  ;;  %v2317_v57 = vld [vmem:[#allocation5 + $0x318] sm:$0xf] }
  0x3e   :  { %1260 = vmatpush.bf16.msrb.mxu1 %v2474_v59  ;;  %v1947_v56 = vld [vmem:[#allocation5 + $0x3c] sm:$0xf0]  ;;  %v2723_v58 = vld [vmem:[#allocation5 + $0x320] sm:$0xf0]  ;;  %v2413_v59 = vld [vmem:[#allocation5 + $0x3d8] sm:$0xf]  ;;  %1354 = vmatpush.bf16.msra.mxu2 %v2298_v45  ;;  %v2286_v62 = vor.u32 %v2713_v50, %v2283_v53 }
  0x3f   :  { %1298 = vmatpush.bf16.msrb.mxu3 %v1998_v1  ;;  %v2747_v60 = vld [vmem:[#allocation5 + $0x3e0] sm:$0xf0]  ;;  %v2626_v61 = vld [vmem:[#allocation5 + $0x1c] sm:$0xf]  ;;  %v1950_v63 = vor.u32 %v2629_v49, %v1947_v56  ;;  %v2318_v0 = vor.u32 %v2723_v58, %v2317_v57  ;;  %v1935_v1 = vld [vmem:[#allocation5 + $0x24] sm:$0xf0] }
  0x40   :  { %1242 = vmatpush.bf16.msrb.mxu0 %v2366_v2  ;;  %v2710_v2 = vld [vmem:[#allocation5 + $0x2bc] sm:$0xf]  ;;  %v2271_v3 = vld [vmem:[#allocation5 + $0x2c4] sm:$0xf0]  ;;  %v2414_v4 = vor.u32 %v2747_v60, %v2413_v59  ;;  %v2305_v5 = vld [vmem:[#allocation5 + $0x300] sm:$0xf] }
  0x41   :  { %v2401_v7 = vld [vmem:[#allocation5 + $0x3c0] sm:$0xf]  ;;  %v2744_v8 = vld [vmem:[#allocation5 + $0x3c8] sm:$0xf0]  ;;  %v2103_v10 = vld [vmem:[#allocation5 + $0x174] sm:$0xf0]  ;;  %v2274_v13 = vor.u32 %v2710_v2, %v2271_v3 }
  0x42   :  { %1261 = vmatpush.bf16.msrb.mxu1 %v2462_v6  ;;  %v2720_v6 = vld [vmem:[#allocation5 + $0x308] sm:$0xf0]  ;;  %v2199_v12 = vld [vmem:[#allocation5 + $0x234] sm:$0xf0]  ;;  %1355 = vmatpush.bf16.msra.mxu2 %v2286_v62  ;;  %v2623_v16 = vld [vmem:[#allocation5 + $0x4] sm:$0xf] }
  0x43   :  { %1299 = vmatpush.bf16.msrb.mxu3 %v1986_v14  ;;  %v2668_v9 = vld [vmem:[#allocation5 + $0x16c] sm:$0xf]  ;;  %v1938_v14 = vor.u32 %v2626_v61, %v1935_v1  ;;  %v2707_v17 = vld [vmem:[#allocation5 + $0x2a4] sm:$0xf]  ;;  %v2259_v18 = vld [vmem:[#allocation5 + $0x2ac] sm:$0xf0] }
  0x44   :  { %1243 = vmatpush.bf16.msrb.mxu0 %v2354_v15  ;;  %v2692_v11 = vld [vmem:[#allocation5 + $0x22c] sm:$0xf]  ;;  %v2306_v15 = vor.u32 %v2720_v6, %v2305_v5  ;;  %v1923_v20 = vld [vmem:[#allocation5 + $0xc] sm:$0xf0]  ;;  %v1881_v21 = vld [vmem:[#allocation2 + $0x10] sm:$0xf]  ;;  %v2106_v23 = vor.u32 %v2668_v9, %v2103_v10 }
  0x45   :  { %v2614_v22 = vld [vmem:[#allocation2 + $0x28] sm:$0xf0]  ;;  %v1889_v24 = vld [vmem:[#allocation2 + $0x18] sm:$0xf]  ;;  %v2202_v25 = vor.u32 %v2692_v11, %v2199_v12  ;;  %v2740_v26 = vld [vmem:[#allocation5 + $0x3ac] sm:$0xf]  ;;  %v1926_v32 = vor.u32 %v2623_v16, %v1923_v20 }
  0x46   :  { %1262 = vmatpush.bf16.msrb.mxu1 %v2450_v19  ;;  %v2402_v19 = vor.u32 %v2744_v8, %v2401_v7  ;;  %v2391_v27 = vld [vmem:[#allocation5 + $0x3b4] sm:$0xf0]  ;;  %v2615_v28 = vld [vmem:[#allocation2 + $0x30] sm:$0xf0]  ;;  %1356 = vmatpush.bf16.msra.mxu2 %v2274_v13  ;;  %v2665_v33 = vld [vmem:[#allocation5 + $0x154] sm:$0xf]  ;;  %v3025_v37 = vor.u32 %v2614_v22, %v1881_v21 }
  0x47   :  { %1300 = vmatpush.bf16.msrb.mxu3 %v1974_v30  ;;  %1177 = vmatmul.bf16.gmra.mxu0 %v3013_v35  ;;  %v2611_v29 = vld [vmem:[#allocation2 + $0x14] sm:$0xf]  ;;  %v1883_v30 = vld [vmem:[#allocation2 + $0x2c] sm:$0xf0]  ;;  %v2394_v38 = vor.u32 %v2740_v26, %v2391_v27  ;;  %v2704_v42 = vld [vmem:[#allocation5 + $0x28c] sm:$0xf]  ;;  %v3027_v45 = vor.u32 %v2615_v28, %v1889_v24 }
  0x48   :  { %1244 = vmatpush.bf16.msrb.mxu0 %v2342_v31  ;;  %1215 = vmatmul.bf16.gmra.mxu2 %v3015_v40  ;;  %v2262_v31 = vor.u32 %v2707_v17, %v2259_v18  ;;  %v2091_v34 = vld [vmem:[#allocation5 + $0x15c] sm:$0xf0]  ;;  %v2247_v43 = vld [vmem:[#allocation5 + $0x294] sm:$0xf0]  ;;  %vm1157_vm0 = vcmask 130048   ;;  %s1848_s20 = sshll.u32 %s3099_s5, 4  ;;  %s1849_s20 = int_to_ptr.hbm [resolvable:$true] %s1848_s20 }
  0x49   :  { %1196 = vmatmul.bf16.gmra.mxu1 %v3017_v41  ;;  %v2187_v39 = vld [vmem:[#allocation5 + $0x21c] sm:$0xf0]  ;;  %v2094_v50 = vor.u32 %v2665_v33, %v2091_v34  ;;  %v2079_v56 = vld [vmem:[#allocation5 + $0x144] sm:$0xf0]  ;;  %v2686_v57 = vld [vmem:[#allocation5 + $0x1fc] sm:$0xf]  ;;  %v2250_v58 = vor.u32 %v2704_v42, %v2247_v43 }
  0x4a   :  { %1263 = vmatpush.bf16.msrb.mxu1 %v2438_v36  ;;  %1234 = vmatmul.bf16.gmra.mxu3 %v3019_v44  ;;  %v2689_v36 = vld [vmem:[#allocation5 + $0x214] sm:$0xf]  ;;  %v2379_v49 = vld [vmem:[#allocation5 + $0x39c] sm:$0xf0]  ;;  %v2175_v60 = vld [vmem:[#allocation5 + $0x204] sm:$0xf0] }
  0x4b   :  { %1301 = vmatpush.bf16.msrb.mxu3 %v1962_v47  ;;  %v3029_v47 = vor.u32 %v2611_v29, %v1883_v30  ;;  %1357 = vmatpush.bf16.msra.mxu2 %v2262_v31  ;;  %v2190_v53 = vor.u32 %v2689_v36, %v2187_v39  ;;  %v2701_v61 = vld [vmem:[#allocation5 + $0x274] sm:$0xf]  ;;  %v2235_v62 = vld [vmem:[#allocation5 + $0x27c] sm:$0xf0]  ;;  %v2178_v2 = vor.u32 %v2686_v57, %v2175_v60  ;;  %v2659_v3 = vld [vmem:[#allocation5 + $0x124] sm:$0xf] }
  0x4c   :  { %1245 = vmatpush.bf16.msrb.mxu0 %v2330_v48  ;;  %v2737_v48 = vld [vmem:[#allocation5 + $0x394] sm:$0xf]  ;;  %v2683_v5 = vld [vmem:[#allocation5 + $0x1e4] sm:$0xf]  ;;  %v2238_v6 = vor.u32 %v2701_v61, %v2235_v62  ;;  %v2163_v8 = vld [vmem:[#allocation5 + $0x1ec] sm:$0xf0] }
  0x4d   :  { %v2382_v59 = vor.u32 %v2737_v48, %v2379_v49  ;;  %v2698_v9 = vld [vmem:[#allocation5 + $0x25c] sm:$0xf]  ;;  %v2223_v10 = vld [vmem:[#allocation5 + $0x264] sm:$0xf0]  ;;  %v2731_v11 = vld [vmem:[#allocation5 + $0x364] sm:$0xf] }
  0x4e   :  { %1264 = vmatpush.bf16.msrb.mxu1 %v2426_v54  ;;  %v2662_v54 = vld [vmem:[#allocation5 + $0x13c] sm:$0xf]  ;;  %v2355_v12 = vld [vmem:[#allocation5 + $0x36c] sm:$0xf0]  ;;  %v2621_v16 = vld [vmem:[#allocation2 + $0x60] sm:$0xf0]  ;;  %v2226_v20 = vor.u32 %v2698_v9, %v2223_v10 }
  0x4f   :  { %1302 = vmatpush.bf16.msrb.mxu3 %v1950_v63  ;;  %v2734_v63 = vld [vmem:[#allocation5 + $0x37c] sm:$0xf]  ;;  %v2082_v1 = vor.u32 %v2662_v54, %v2079_v56  ;;  %1358 = vmatpush.bf16.msra.mxu2 %v2250_v58  ;;  %v2656_v17 = vld [vmem:[#allocation5 + $0x10c] sm:$0xf]  ;;  %v2055_v18 = vld [vmem:[#allocation5 + $0x114] sm:$0xf0]  ;;  %v2358_v21 = vor.u32 %v2731_v11, %v2355_v12 }
  0x50   :  { %1246 = vmatpush.bf16.msrb.mxu0 %v2318_v0  ;;  %v2367_v0 = vld [vmem:[#allocation5 + $0x384] sm:$0xf0]  ;;  %v1917_v22 = vld [vmem:[#allocation2 + $0x50] sm:$0xf]  ;;  %v2695_v24 = vld [vmem:[#allocation5 + $0x244] sm:$0xf]  ;;  %v2058_v29 = vor.u32 %v2656_v17, %v2055_v18 }
  0x51   :  { %v2370_v7 = vor.u32 %v2734_v63, %v2367_v0  ;;  %v2622_v26 = vld [vmem:[#allocation2 + $0x68] sm:$0xf0]  ;;  %v2728_v27 = vld [vmem:[#allocation5 + $0x34c] sm:$0xf]  ;;  %v2343_v28 = vld [vmem:[#allocation5 + $0x354] sm:$0xf0] }
  0x52   :  { %1265 = vmatpush.bf16.msrb.mxu1 %v2414_v4  ;;  %v2067_v4 = vld [vmem:[#allocation5 + $0x12c] sm:$0xf0]  ;;  %v2618_v30 = vld [vmem:[#allocation2 + $0x4c] sm:$0xf]  ;;  %v1911_v31 = vld [vmem:[#allocation2 + $0x64] sm:$0xf0]  ;;  %v2346_v42 = vor.u32 %v2728_v27, %v2343_v28 }
  0x53   :  { %1303 = vmatpush.bf16.msrb.mxu3 %v1938_v14  ;;  %v2070_v13 = vor.u32 %v2659_v3, %v2067_v4  ;;  %v2166_v14 = vor.u32 %v2683_v5, %v2163_v8  ;;  %1359 = vmatpush.bf16.msra.mxu2 %v2238_v6  ;;  %v2043_v34 = vld [vmem:[#allocation5 + $0xfc] sm:$0xf0]  ;;  %v2677_v36 = vld [vmem:[#allocation5 + $0x1b4] sm:$0xf]  ;;  %v2013_v48 = vld [vmem:[#allocation5 + $0xb0] sm:$0xf] }
  0x54   :  { %1247 = vmatpush.bf16.msrb.mxu0 %v2306_v15  ;;  %v1909_v15 = vld [vmem:[#allocation2 + $0x48] sm:$0xf]  ;;  %v2139_v43 = vld [vmem:[#allocation5 + $0x1bc] sm:$0xf0]  ;;  %v2646_v49 = vld [vmem:[#allocation5 + $0xb8] sm:$0xf0] }
  0x55   :  { %v3036_v39 = vor.u32 %v2621_v16, %v1909_v15  ;;  %v2725_v54 = vld [vmem:[#allocation5 + $0x334] sm:$0xf]  ;;  %v2331_v56 = vld [vmem:[#allocation5 + $0x33c] sm:$0xf0]  ;;  %v2142_v58 = vor.u32 %v2677_v36, %v2139_v43  ;;  %v2031_v60 = vld [vmem:[#allocation5 + $0xe4] sm:$0xf0]  ;;  %v2014_v62 = vor.u32 %v2646_v49, %v2013_v48 }
  0x56   :  { %1266 = vmatpush.bf16.msrb.mxu1 %v2402_v19  ;;  %v2680_v19 = vld [vmem:[#allocation5 + $0x1cc] sm:$0xf]  ;;  %v2674_v61 = vld [vmem:[#allocation5 + $0x19c] sm:$0xf]  ;;  %v2334_v63 = vor.u32 %v2725_v54, %v2331_v56  ;;  %v2127_v0 = vld [vmem:[#allocation5 + $0x1a4] sm:$0xf0] }
  0x57   :  { %1304 = vmatpush.bf16.msrb.mxu3 %v1926_v32  ;;  %1248 = vmatmul.bf16.vlgmr.msrb.gmra.mxu0 %v3025_v37  ;;  %v2653_v32 = vld [vmem:[#allocation5 + $0xf4] sm:$0xf]  ;;  %v2722_v3 = vld [vmem:[#allocation5 + $0x31c] sm:$0xf]  ;;  %v2319_v4 = vld [vmem:[#allocation5 + $0x324] sm:$0xf0]  ;;  %v2130_v8 = vor.u32 %v2674_v61, %v2127_v0 }
  0x58   :  { %1316 = vmatpush.bf16.msra.mxu0 %v2106_v23  ;;  %2507 = vmatmul.msk.bf16.vlgmr.msrb.gmra.mxu2 %vm1157_vm0, %v3027_v45  ;;  %v2151_v23 = vld [vmem:[#allocation5 + $0x1d4] sm:$0xf0]  ;;  %v2046_v57 = vor.u32 %v2653_v32, %v2043_v34  ;;  %v2647_v6 = vld [vmem:[#allocation5 + $0xc4] sm:$0xf]  ;;  %v2115_v10 = vld [vmem:[#allocation5 + $0x18c] sm:$0xf0] }
  0x59   :  { %1267 = vmatmul.bf16.vlgmr.msrb.gmra.mxu1 %v3029_v47  ;;  %v2154_v33 = vor.u32 %v2680_v19, %v2151_v23  ;;  %1360 = vmatpush.bf16.msra.mxu2 %v2226_v20  ;;  %v2671_v9 = vld [vmem:[#allocation5 + $0x184] sm:$0xf]  ;;  %v2764_v15 = vld [vmem:[#allocation5 + $0x46c] sm:$0xf]  ;;  %v2487_v16 = vld [vmem:[#allocation5 + $0x474] sm:$0xf0] }
  0x5a   :  { %1335 = vmatpush.bf16.msra.mxu1 %v2202_v25  ;;  %1305 = vmatmul.bf16.vlgmr.msrb.gmra.mxu3 %v3001_v46  ;;  %v2211_v25 = vld [vmem:[#allocation5 + $0x24c] sm:$0xf0]  ;;  %v2719_v11 = vld [vmem:[#allocation5 + $0x304] sm:$0xf]  ;;  %v1989_v18 = vld [vmem:[#allocation5 + $0x80] sm:$0xf] }
  0x5b   :  { %1373 = vmatpush.bf16.msra.mxu3 %v2394_v38  ;;  %v2214_v38 = vor.u32 %v2695_v24, %v2211_v25  ;;  %v2109_v17 = vld [vmem:[#allocation5 + $0x170] sm:$0xf]  ;;  %v2640_v19 = vld [vmem:[#allocation5 + $0x88] sm:$0xf0]  ;;  %v2118_v24 = vor.u32 %v2671_v9, %v2115_v10  ;;  %v2490_v25 = vor.u32 %v2764_v15, %v2487_v16  ;;  %v2761_v27 = vld [vmem:[#allocation5 + $0x454] sm:$0xf] }
  0x5c   :  { %1317 = vmatpush.bf16.msra.mxu0 %v2094_v50  ;;  %v3038_v50 = vor.u32 %v2622_v26, %v1917_v22  ;;  %v2767_v22 = vld [vmem:[#allocation5 + $0x484] sm:$0xf]  ;;  %v2499_v23 = vld [vmem:[#allocation5 + $0x48c] sm:$0xf0]  ;;  %v2475_v28 = vld [vmem:[#allocation5 + $0x45c] sm:$0xf0] }
  0x5d   :  { %1361 = vmatpush.bf16.msra.mxu2 %v2214_v38  ;;  %v2637_v32 = vld [vmem:[#allocation5 + $0x70] sm:$0xf0]  ;;  %v2478_v34 = vor.u32 %v2761_v27, %v2475_v28  ;;  %v2097_v36 = vld [vmem:[#allocation5 + $0x158] sm:$0xf]  ;;  %v2667_v38 = vld [vmem:[#allocation5 + $0x160] sm:$0xf0] }
  0x5e   :  { %1336 = vmatpush.bf16.msra.mxu1 %v2190_v53  ;;  %v3040_v53 = vor.u32 %v2618_v30, %v1911_v31  ;;  %v1977_v31 = vld [vmem:[#allocation5 + $0x68] sm:$0xf]  ;;  %v1965_v49 = vld [vmem:[#allocation5 + $0x50] sm:$0xf]  ;;  %v2634_v54 = vld [vmem:[#allocation5 + $0x58] sm:$0xf0]  ;;  %v2098_v56 = vor.u32 %v2667_v38, %v2097_v36 }
  0x5f   :  { %1374 = vmatpush.bf16.msra.mxu3 %v2382_v59  ;;  %v2650_v59 = vld [vmem:[#allocation5 + $0xdc] sm:$0xf]  ;;  %v2463_v43 = vld [vmem:[#allocation5 + $0x444] sm:$0xf0]  ;;  %v1978_v48 = vor.u32 %v2637_v32, %v1977_v31  ;;  %v2451_v61 = vld [vmem:[#allocation5 + $0x42c] sm:$0xf0] }
  0x60   :  { %1318 = vmatpush.bf16.msra.mxu0 %v2082_v1  ;;  %v2001_v1 = vld [vmem:[#allocation5 + $0x98] sm:$0xf]  ;;  %v2034_v5 = vor.u32 %v2650_v59, %v2031_v60  ;;  %v2664_v59 = vld [vmem:[#allocation5 + $0x148] sm:$0xf0]  ;;  %v2755_v60 = vld [vmem:[#allocation5 + $0x424] sm:$0xf] }
  0x61   :  { %1430 = vmatpush.bf16.msrb.mxu2 %v2014_v62  ;;  %v1966_v62 = vor.u32 %v2634_v54, %v1965_v49  ;;  %v2631_v0 = vld [vmem:[#allocation5 + $0x40] sm:$0xf0]  ;;  %v2752_v9 = vld [vmem:[#allocation5 + $0x40c] sm:$0xf]  ;;  %v2439_v10 = vld [vmem:[#allocation5 + $0x414] sm:$0xf0] }
  0x62   :  { %1337 = vmatpush.bf16.msra.mxu1 %v2178_v2  ;;  %v2643_v2 = vld [vmem:[#allocation5 + $0xa0] sm:$0xf0]  ;;  %v2277_v16 = vld [vmem:[#allocation5 + $0x2c0] sm:$0xf]  ;;  %v2625_v27 = vld [vmem:[#allocation5 + $0x10] sm:$0xf0] }
  0x63   :  { %1375 = vmatpush.bf16.msra.mxu3 %v2370_v7  ;;  %v2019_v7 = vld [vmem:[#allocation5 + $0xcc] sm:$0xf0]  ;;  %v2002_v12 = vor.u32 %v2643_v2, %v2001_v1  ;;  %v2718_v2 = vld [vmem:[#allocation5 + $0x2f8] sm:$0xf0]  ;;  %v2415_v36 = vld [vmem:[#allocation5 + $0x3e4] sm:$0xf0] }
  0x64   :  { %1319 = vmatpush.bf16.msra.mxu0 %v2070_v13  ;;  %v2322_v13 = vor.u32 %v2722_v3, %v2319_v4  ;;  %v2022_v20 = vor.u32 %v2647_v6, %v2019_v7  ;;  %v2301_v1 = vld [vmem:[#allocation5 + $0x2f0] sm:$0xf]  ;;  %v2073_v6 = vld [vmem:[#allocation5 + $0x128] sm:$0xf]  ;;  %v2661_v7 = vld [vmem:[#allocation5 + $0x130] sm:$0xf0] }
  0x65   :  { %1431 = vmatpush.bf16.msrb.mxu2 %v2002_v12  ;;  %v2302_v3 = vor.u32 %v2718_v2, %v2301_v1  ;;  %v2715_v12 = vld [vmem:[#allocation5 + $0x2e0] sm:$0xf0]  ;;  %v2397_v31 = vld [vmem:[#allocation5 + $0x3b0] sm:$0xf]  ;;  %v2742_v32 = vld [vmem:[#allocation5 + $0x3b8] sm:$0xf0] }
  0x66   :  { %1338 = vmatpush.bf16.msra.mxu1 %v2166_v14  ;;  %v2307_v14 = vld [vmem:[#allocation5 + $0x30c] sm:$0xf0]  ;;  %v2398_v49 = vor.u32 %v2742_v32, %v2397_v31  ;;  %v2706_v2 = vld [vmem:[#allocation5 + $0x298] sm:$0xf0] }
  0x67   :  { %1376 = vmatpush.bf16.msra.mxu3 %v2358_v21  ;;  %1253 = vmatmul.bf16.gmra.mxu0 %v3036_v39  ;;  %v2670_v21 = vld [vmem:[#allocation5 + $0x178] sm:$0xf0]  ;;  %v2310_v26 = vor.u32 %v2719_v11, %v2307_v14  ;;  %v2628_v14 = vld [vmem:[#allocation5 + $0x28] sm:$0xf0]  ;;  %v2253_v1 = vld [vmem:[#allocation5 + $0x290] sm:$0xf] }
  0x68   :  { %1320 = vmatpush.bf16.msra.mxu0 %v2058_v29  ;;  %2508 = vmatmul.msk.bf16.gmra.mxu2 %vm1157_vm0, %v3038_v50  ;;  %v1990_v29 = vor.u32 %v2640_v19, %v1989_v18  ;;  %v2110_v30 = vor.u32 %v2670_v21, %v2109_v17  ;;  %v2712_v17 = vld [vmem:[#allocation5 + $0x2c8] sm:$0xf0]  ;;  %v2074_v18 = vor.u32 %v2661_v7, %v2073_v6  ;;  %v2658_v21 = vld [vmem:[#allocation5 + $0x118] sm:$0xf0]  ;;  %v2373_v6 = vld [vmem:[#allocation5 + $0x380] sm:$0xf] }
  0x69   :  { %1272 = vmatmul.bf16.gmra.mxu1 %v3040_v53  ;;  %v2442_v19 = vor.u32 %v2752_v9, %v2439_v10  ;;  %v2736_v7 = vld [vmem:[#allocation5 + $0x388] sm:$0xf0]  ;;  %v2649_v9 = vld [vmem:[#allocation5 + $0xd0] sm:$0xf0]  ;;  %v2730_v32 = vld [vmem:[#allocation5 + $0x358] sm:$0xf0] }
  0x6a   :  { %1339 = vmatpush.bf16.msra.mxu1 %v2154_v33  ;;  %1310 = vmatmul.bf16.gmra.mxu3 %v3013_v35  ;;  %v2502_v33 = vor.u32 %v2767_v22, %v2499_v23  ;;  %v2749_v22 = vld [vmem:[#allocation5 + $0x3f4] sm:$0xf]  ;;  %v2427_v23 = vld [vmem:[#allocation5 + $0x3fc] sm:$0xf0] }
  0x6b   :  { %1377 = vmatpush.bf16.msra.mxu3 %v2346_v42  ;;  %v2758_v42 = vld [vmem:[#allocation5 + $0x43c] sm:$0xf]  ;;  %1432 = vmatpush.bf16.msrb.mxu2 %v1990_v29  ;;  %v2430_v29 = vor.u32 %v2749_v22, %v2427_v23 }
  0x6c   :  { %1321 = vmatpush.bf16.msra.mxu0 %v2046_v57  ;;  %v2466_v57 = vor.u32 %v2758_v42, %v2463_v43  ;;  %v2265_v42 = vld [vmem:[#allocation5 + $0x2a8] sm:$0xf]  ;;  %v2709_v43 = vld [vmem:[#allocation5 + $0x2b0] sm:$0xf0] }
  0x6e   :  { %1340 = vmatpush.bf16.msra.mxu1 %v2142_v58  ;;  %v2085_v58 = vld [vmem:[#allocation5 + $0x140] sm:$0xf] }
  0x6f   :  { %1378 = vmatpush.bf16.msra.mxu3 %v2334_v63  ;;  %1433 = vmatpush.bf16.msrb.mxu2 %v1978_v48  ;;  %v1953_v63 = vld [vmem:[#allocation5 + $0x38] sm:$0xf]  ;;  %v2086_v4 = vor.u32 %v2664_v59, %v2085_v58  ;;  %v2037_v48 = vld [vmem:[#allocation5 + $0xe0] sm:$0xf]  ;;  %v2739_v59 = vld [vmem:[#allocation5 + $0x3a0] sm:$0xf0] }
  0x70   :  { %1322 = vmatpush.bf16.msra.mxu0 %v2034_v5  ;;  %v2454_v5 = vor.u32 %v2755_v60, %v2451_v61  ;;  %v1954_v11 = vor.u32 %v2631_v0, %v1953_v63  ;;  %v2385_v58 = vld [vmem:[#allocation5 + $0x398] sm:$0xf]  ;;  %v2743_v60 = vld [vmem:[#allocation5 + $0x3c4] sm:$0xf]  ;;  %v2403_v61 = vld [vmem:[#allocation5 + $0x3cc] sm:$0xf0]  ;;  %v2266_v63 = vor.u32 %v2709_v43, %v2265_v42 }
  0x71   :  { %v2694_v0 = vld [vmem:[#allocation5 + $0x238] sm:$0xf0]  ;;  %v2169_v43 = vld [vmem:[#allocation5 + $0x1e8] sm:$0xf] }
  0x72   :  { %1341 = vmatpush.bf16.msra.mxu1 %v2130_v8  ;;  %v2289_v8 = vld [vmem:[#allocation5 + $0x2d8] sm:$0xf] }
  0x73   :  { %1379 = vmatpush.bf16.msra.mxu3 %v2322_v13  ;;  %1434 = vmatpush.bf16.msrb.mxu2 %v1966_v62  ;;  %v1941_v13 = vld [vmem:[#allocation5 + $0x20] sm:$0xf]  ;;  %v2290_v15 = vor.u32 %v2715_v12, %v2289_v8  ;;  %v2205_v62 = vld [vmem:[#allocation5 + $0x230] sm:$0xf]  ;;  %v2025_v8 = vld [vmem:[#allocation5 + $0xc8] sm:$0xf]  ;;  %v2254_v12 = vor.u32 %v2706_v2, %v2253_v1 }
  0x74   :  { %1323 = vmatpush.bf16.msra.mxu0 %v2022_v20  ;;  %v2061_v20 = vld [vmem:[#allocation5 + $0x110] sm:$0xf]  ;;  %v2206_v10 = vor.u32 %v2694_v0, %v2205_v62  ;;  %v2757_v62 = vld [vmem:[#allocation5 + $0x430] sm:$0xf0]  ;;  %v2682_v1 = vld [vmem:[#allocation5 + $0x1d8] sm:$0xf0] }
  0x75   :  { %v2062_v28 = vor.u32 %v2658_v21, %v2061_v20  ;;  %v2361_v20 = vld [vmem:[#allocation5 + $0x368] sm:$0xf]  ;;  %v2733_v21 = vld [vmem:[#allocation5 + $0x370] sm:$0xf0]  ;;  %v2157_v0 = vld [vmem:[#allocation5 + $0x1d0] sm:$0xf] }
  0x76   :  { %1342 = vmatpush.bf16.msra.mxu1 %v2118_v24  ;;  %v1942_v24 = vor.u32 %v2628_v14, %v1941_v13  ;;  %v2766_v13 = vld [vmem:[#allocation5 + $0x478] sm:$0xf0]  ;;  %v2193_v14 = vld [vmem:[#allocation5 + $0x218] sm:$0xf] }
  0x77   :  { %1380 = vmatpush.bf16.msra.mxu3 %v2310_v26  ;;  %1324 = vmatmul.bf16.vlgmr.msra.gmra.mxu0 %v3005_v52  ;;  %v1929_v26 = vld [vmem:[#allocation5 + $0x8] sm:$0xf] }
  0x78   :  { %1392 = vmatpush.bf16.msrb.mxu0 %v2490_v25  ;;  %1362 = vmatmul.bf16.vlgmr.msra.gmra.mxu2 %v3007_v55  ;;  %v2278_v25 = vor.u32 %v2712_v17, %v2277_v16  ;;  %v1930_v38 = vor.u32 %v2625_v27, %v1929_v26  ;;  %v2374_v16 = vor.u32 %v2736_v7, %v2373_v6  ;;  %v2241_v17 = vld [vmem:[#allocation5 + $0x278] sm:$0xf]  ;;  %v2724_v6 = vld [vmem:[#allocation5 + $0x328] sm:$0xf0]  ;;  %v2754_v7 = vld [vmem:[#allocation5 + $0x418] sm:$0xf0] }
  0x79   :  { %1343 = vmatmul.bf16.vlgmr.msra.gmra.mxu1 %v3003_v51  ;;  %1435 = vmatpush.bf16.msrb.mxu2 %v1954_v11  ;;  %v2493_v11 = vld [vmem:[#allocation5 + $0x470] sm:$0xf]  ;;  %v2362_v27 = vor.u32 %v2733_v21, %v2361_v20  ;;  %v2421_v21 = vld [vmem:[#allocation5 + $0x3e0] sm:$0xf] }
  0x7a   :  { %1418 = vmatpush.bf16.msrb.mxu1 %v2502_v33  ;;  %1381 = vmatmul.bf16.vlgmr.msra.gmra.mxu3 %v3025_v37  ;;  %v2655_v33 = vld [vmem:[#allocation5 + $0x100] sm:$0xf0]  ;;  %v2494_v22 = vor.u32 %v2766_v13, %v2493_v11  ;;  %v2721_v13 = vld [vmem:[#allocation5 + $0x310] sm:$0xf0] }
  0x7b   :  { %1449 = vmatpush.bf16.msrb.mxu3 %v2110_v30  ;;  %v2049_v30 = vld [vmem:[#allocation5 + $0xf8] sm:$0xf] }
  0x7c   :  { %1393 = vmatpush.bf16.msrb.mxu0 %v2478_v34  ;;  %v2746_v34 = vld [vmem:[#allocation5 + $0x3dc] sm:$0xf]  ;;  %v2050_v54 = vor.u32 %v2655_v33, %v2049_v30  ;;  %v2349_v30 = vld [vmem:[#allocation5 + $0x350] sm:$0xf]  ;;  %v2229_v33 = vld [vmem:[#allocation5 + $0x260] sm:$0xf] }
  0x7d   :  { %1436 = vmatpush.bf16.msrb.mxu2 %v1942_v24  ;;  %v2481_v24 = vld [vmem:[#allocation5 + $0x458] sm:$0xf] }
  0x7e   :  { %1487 = vmatpush.bf16.msra.mxu1 %v2302_v3  ;;  %v2386_v3 = vor.u32 %v2739_v59, %v2385_v58  ;;  %v2727_v58 = vld [vmem:[#allocation5 + $0x340] sm:$0xf0]  ;;  %v2217_v59 = vld [vmem:[#allocation5 + $0x248] sm:$0xf] }
  0x7f   :  { %1450 = vmatpush.bf16.msrb.mxu3 %v2098_v56  ;;  %v2418_v56 = vor.u32 %v2746_v34, %v2415_v36  ;;  %v2700_v34 = vld [vmem:[#allocation5 + $0x268] sm:$0xf0]  ;;  %v2469_v36 = vld [vmem:[#allocation5 + $0x440] sm:$0xf] }
  0x80   :  { %1394 = vmatpush.bf16.msrb.mxu0 %v2466_v57  ;;  %v2652_v57 = vld [vmem:[#allocation5 + $0xe8] sm:$0xf0] }
  0x81   :  { %1437 = vmatpush.bf16.msrb.mxu2 %v1930_v38  ;;  %v2760_v38 = vld [vmem:[#allocation5 + $0x448] sm:$0xf0] }
  0x82   :  { %1488 = vmatpush.bf16.msra.mxu1 %v2290_v15  ;;  %v2691_v15 = vld [vmem:[#allocation5 + $0x220] sm:$0xf0] }
  0x83   :  { %1451 = vmatpush.bf16.msrb.mxu3 %v2086_v4  ;;  %v2038_v4 = vor.u32 %v2652_v57, %v2037_v48  ;;  %v2194_v23 = vor.u32 %v2691_v15, %v2193_v14  ;;  %v2685_v48 = vld [vmem:[#allocation5 + $0x1f0] sm:$0xf0]  ;;  %v2470_v57 = vor.u32 %v2760_v38, %v2469_v36  ;;  %v2433_v14 = vld [vmem:[#allocation5 + $0x3f8] sm:$0xf]  ;;  %v2751_v15 = vld [vmem:[#allocation5 + $0x400] sm:$0xf0] }
  0x84   :  { %1395 = vmatpush.bf16.msrb.mxu0 %v2454_v5  ;;  %v2406_v5 = vor.u32 %v2743_v60, %v2403_v61  ;;  %v2697_v60 = vld [vmem:[#allocation5 + $0x250] sm:$0xf0]  ;;  %v2457_v61 = vld [vmem:[#allocation5 + $0x428] sm:$0xf]  ;;  %v2434_v20 = vor.u32 %v2751_v15, %v2433_v14  ;;  %v2776_v36 = vld [vmem:[#allocation8 + $0x30] sm:$0xff] }
  0x85   :  { %1506 = vmatpush.bf16.msra.mxu2 %v2398_v49  ;;  %v2350_v49 = vor.u32 %v2730_v32, %v2349_v30  ;;  %v2745_v30 = vld [vmem:[#allocation5 + $0x3d0] sm:$0xf0] }
  0x86   :  { %1489 = vmatpush.bf16.msra.mxu1 %v2278_v25  ;;  %v2763_v25 = vld [vmem:[#allocation5 + $0x460] sm:$0xf0]  ;;  %v2777_v32 = vld [vmem:[#allocation8 + $0x38] sm:$0xff] }
  0x87   :  { %1452 = vmatpush.bf16.msrb.mxu3 %v2074_v18  ;;  %1329 = vmatmul.bf16.gmra.mxu0 %v3017_v41  ;;  %v2703_v18 = vld [vmem:[#allocation5 + $0x280] sm:$0xf0]  ;;  %v2482_v31 = vor.u32 %v2763_v25, %v2481_v24  ;;  %v2121_v24 = vld [vmem:[#allocation5 + $0x188] sm:$0xf]  ;;  %v2673_v25 = vld [vmem:[#allocation5 + $0x190] sm:$0xf0] }
  0x88   :  { %1396 = vmatpush.bf16.msrb.mxu0 %v2442_v19  ;;  %1367 = vmatmul.bf16.gmra.mxu2 %v3019_v44  ;;  %v2026_v19 = vor.u32 %v2649_v9, %v2025_v8  ;;  %v2242_v26 = vor.u32 %v2703_v18, %v2241_v17  ;;  %v2158_v8 = vor.u32 %v2682_v1, %v2157_v0  ;;  %v2145_v9 = vld [vmem:[#allocation5 + $0x1b8] sm:$0xf]  ;;  %v2133_v17 = vld [vmem:[#allocation5 + $0x1a0] sm:$0xf]  ;;  %v2676_v18 = vld [vmem:[#allocation5 + $0x1a8] sm:$0xf0] }
  0x89   :  { %1348 = vmatmul.bf16.gmra.mxu1 %v3015_v40  ;;  %1507 = vmatpush.bf16.msra.mxu2 %v2386_v3  ;;  %v2218_v3 = vor.u32 %v2697_v60, %v2217_v59 }
  0x8a   :  { %1386 = vmatmul.bf16.gmra.mxu3 %v3036_v39  ;;  %1490 = vmatpush.bf16.msra.mxu1 %v2266_v63  ;;  %v2170_v63 = vor.u32 %v2685_v48, %v2169_v43  ;;  %v2774_v43 = vld [vmem:[#allocation8 + $0x20] sm:$0xff] }
  0x8b   :  { %1453 = vmatpush.bf16.msrb.mxu3 %v2062_v28  ;;  %v2181_v28 = vld [vmem:[#allocation5 + $0x200] sm:$0xf] }
  0x8c   :  { %1397 = vmatpush.bf16.msrb.mxu0 %v2430_v29  ;;  %v2688_v29 = vld [vmem:[#allocation5 + $0x208] sm:$0xf0] }
  0x8d   :  { %1508 = vmatpush.bf16.msra.mxu2 %v2374_v16  ;;  %v2182_v42 = vor.u32 %v2688_v29, %v2181_v28  ;;  %v2769_v28 = vld [vmem:[#allocation5 + $0x490] sm:$0xf0]  ;;  %v2409_v29 = vld [vmem:[#allocation5 + $0x3c8] sm:$0xf] }
  0x8e   :  { %1491 = vmatpush.bf16.msra.mxu1 %v2254_v12  ;;  %v2313_v12 = vld [vmem:[#allocation5 + $0x308] sm:$0xf] }
  0x8f   :  { %1454 = vmatpush.bf16.msrb.mxu3 %v2050_v54  ;;  %v2337_v54 = vld [vmem:[#allocation5 + $0x338] sm:$0xf] }
  0x90   :  { %1398 = vmatpush.bf16.msrb.mxu0 %v2418_v56  ;;  %v2230_v56 = vor.u32 %v2700_v34, %v2229_v33  ;;  %v2338_v2 = vor.u32 %v2727_v58, %v2337_v54  ;;  %v2410_v34 = vor.u32 %v2745_v30, %v2409_v29  ;;  %v2771_v58 = vld [vmem:[#allocation8 + $0x8] sm:$0xff] }
  0x91   :  { %1509 = vmatpush.bf16.msra.mxu2 %v2362_v27  ;;  %v2505_v27 = vld [vmem:[#allocation5 + $0x488] sm:$0xf] }
  0x92   :  { %1492 = vmatpush.bf16.msra.mxu1 %v2242_v26  ;;  %v2506_v33 = vor.u32 %v2769_v28, %v2505_v27 }
  0x93   :  { %1455 = vmatpush.bf16.msrb.mxu3 %v2038_v4  ;;  %v2458_v4 = vor.u32 %v2757_v62, %v2457_v61  ;;  %v2770_v62 = vld [vmem:[#allocation8] sm:$0xff] }
  0x94   :  { %1399 = vmatpush.bf16.msrb.mxu0 %v2406_v5  ;;  %v2325_v5 = vld [vmem:[#allocation5 + $0x320] sm:$0xf] }
  0x95   :  { %1510 = vmatpush.bf16.msra.mxu2 %v2350_v49 }
  0x96   :  { %1493 = vmatpush.bf16.msra.mxu1 %v2230_v56 }
  0x97   :  { %1456 = vmatpush.bf16.msrb.mxu3 %v2026_v19  ;;  %1400 = vmatmul.bf16.vlgmr.msrb.gmra.mxu0 %v3029_v47  ;;  %v2314_v19 = vor.u32 %v2721_v13, %v2313_v12 }
  0x98   :  { %1468 = vmatpush.bf16.msra.mxu0 %v2206_v10  ;;  %1438 = vmatmul.bf16.vlgmr.msrb.gmra.mxu2 %v3001_v46  ;;  %v2445_v46 = vld [vmem:[#allocation5 + $0x410] sm:$0xf]  ;;  %v2679_v10 = vld [vmem:[#allocation5 + $0x1c0] sm:$0xf0] }
  0x99   :  { %2509 = vmatmul.msk.bf16.vlgmr.msrb.gmra.mxu1 %vm1157_vm0, %v3027_v45  ;;  %1511 = vmatpush.bf16.msra.mxu2 %v2338_v2  ;;  %v2446_v11 = vor.u32 %v2754_v7, %v2445_v46  ;;  %v2146_v16 = vor.u32 %v2679_v10, %v2145_v9 }
  0x9a   :  { %1457 = vmatmul.bf16.vlgmr.msrb.gmra.mxu3 %v3005_v52  ;;  %v2326_v52 = vor.u32 %v2724_v6, %v2325_v5  ;;  %1494 = vmatpush.bf16.msra.mxu1 %v2218_v3 }
  0x9b   :  { %1525 = vmatpush.bf16.msra.mxu3 %v2494_v22  ;;  %v2748_v22 = vld [vmem:[#allocation5 + $0x3e8] sm:$0xf0] }
  0x9c   :  { %1469 = vmatpush.bf16.msra.mxu0 %v2194_v23  ;;  %v2134_v23 = vor.u32 %v2676_v18, %v2133_v17  ;;  %v2422_v26 = vor.u32 %v2748_v22, %v2421_v21 }
  0x9d   :  { %1512 = vmatpush.bf16.msra.mxu2 %v2326_v52 }
  0x9e   :  { %1777 = vmatpush.bf16.msrb.mxu1 %v2777_v32 }
  0x9f   :  { %1526 = vmatpush.bf16.msra.mxu3 %v2482_v31  ;;  %v2122_v31 = vor.u32 %v2673_v25, %v2121_v24  ;;  %v2785_v24 = vld [vmem:[#allocation8 + $0x78] sm:$0xff] }
  0xa0   :  { %1470 = vmatpush.bf16.msra.mxu0 %v2182_v42 }
  0xa1   :  { %1513 = vmatpush.bf16.msra.mxu2 %v2314_v19 }
  0xa2   :  { %1778 = vmatpush.bf16.msrb.mxu1 %v2776_v36 }
  0xa3   :  { %1527 = vmatpush.bf16.msra.mxu3 %v2470_v57  ;;  %v2772_v57 = vld [vmem:[#allocation8 + $0x10] sm:$0xff] }
  0xa4   :  { %1471 = vmatpush.bf16.msra.mxu0 %v2170_v63 }
  0xa5   :  { %1796 = vmatpush.bf16.msrb.mxu2 %v2785_v24 }
  0xa7   :  { %1528 = vmatpush.bf16.msra.mxu3 %v2458_v4  ;;  %1405 = vmatmul.bf16.gmra.mxu0 %v3040_v53 }
  0xa8   :  { %1472 = vmatpush.bf16.msra.mxu0 %v2158_v8  ;;  %1443 = vmatmul.bf16.gmra.mxu2 %v3013_v35  ;;  %v2775_v35 = vld [vmem:[#allocation8 + $0x28] sm:$0xff] }
  0xa9   :  { %2510 = vmatmul.msk.bf16.gmra.mxu1 %vm1157_vm0, %v3038_v50 }
  0xaa   :  { %1462 = vmatmul.bf16.gmra.mxu3 %v3017_v41  ;;  %1779 = vmatpush.bf16.msrb.mxu1 %v2775_v35  ;;  %v2773_v41 = vld [vmem:[#allocation8 + $0x18] sm:$0xff] }
  0xab   :  { %1529 = vmatpush.bf16.msra.mxu3 %v2446_v11 }
  0xac   :  { %1473 = vmatpush.bf16.msra.mxu0 %v2146_v16 }
  0xae   :  { %1780 = vmatpush.bf16.msrb.mxu1 %v2774_v43  ;;  %v2783_v43 = vld [vmem:[#allocation8 + $0x68] sm:$0xff] }
  0xaf   :  { %1530 = vmatpush.bf16.msra.mxu3 %v2434_v20 }
  0xb0   :  { %1474 = vmatpush.bf16.msra.mxu0 %v2134_v23 }
  0xb2   :  { %1781 = vmatpush.bf16.msrb.mxu1 %v2773_v41 }
  0xb3   :  { %1531 = vmatpush.bf16.msra.mxu3 %v2422_v26 }
  0xb4   :  { %1475 = vmatpush.bf16.msra.mxu0 %v2122_v31  ;;  %v1173_v38 = vpop.f32.mrf.mxu0  ;;  %v2784_v31 = vld [vmem:[#allocation8 + $0x70] sm:$0xff] }
  0xb5   :  { %1797 = vmatpush.bf16.msrb.mxu2 %v2784_v31 }
  0xb6   :  { %v1192_v42 = vpop.f32.mrf.mxu1  ;;  %1782 = vmatpush.bf16.msrb.mxu1 %v2772_v57 }
  0xb7   :  { %1532 = vmatpush.bf16.msra.mxu3 %v2410_v34  ;;  %1476 = vmatmul.bf16.vlgmr.msra.gmra.mxu0 %v3003_v51 }
  0xb8   :  { %1551 = vmatpush.bf16.msrb.mxu0 %v2506_v33  ;;  %1514 = vmatmul.bf16.vlgmr.msra.gmra.mxu2 %v3025_v37 }
  0xb9   :  { %1495 = vmatmul.bf16.vlgmr.msra.gmra.mxu1 %v3007_v55  ;;  %v3072_v55 = vld [vmem:[#allocation7] sm:$0x7]  ;;  %1798 = vmatpush.bf16.msrb.mxu2 %v2783_v43 }
  0xba   :  { %1533 = vmatmul.bf16.vlgmr.msra.gmra.mxu3 %v3029_v47  ;;  %1783 = vmatpush.bf16.msrb.mxu1 %v2771_v58  ;;  %v297_v47 = vperm.slane %v3072_v55, 0  ;;  %v2793_v43 = vld [vmem:[#allocation8 + $0xb8] sm:$0xff] }
  0xbb   :  { %v1211_v48 = vpop.f32.mrf.mxu2  ;;  %1815 = vmatpush.bf16.msrb.mxu3 %v2793_v43 }
  0xbc   :  { %v1175_v49 = vpop.f32.mrf.mxu0  ;;  %v1174_v2 = vadd.f32 %v1173_v38, %v297_v47 }
  0xbd   :  { %v1230_v54 = vpop.f32.mrf.mxu3  ;;  %v1176_v3 = vadd.f32 %v1175_v49, %v297_v47  ;;  %v2782_v49 = vld [vmem:[#allocation8 + $0x60] sm:$0xff] }
  0xbe   :  { %v1194_v56 = vpop.f32.mrf.mxu1  ;;  %1784 = vmatpush.bf16.msrb.mxu1 %v2770_v62  ;;  %v1193_v5 = vadd.f32 %v1192_v42, %v1174_v2  ;;  %1799 = vmatpush.bf16.msrb.mxu2 %v2782_v49 }
  0xbf   :  { %v1195_v7 = vadd.f32 %v1194_v56, %v1176_v3  ;;  %v2779_v3 = vld [vmem:[#allocation8 + $0x48] sm:$0xff] }
  0xc3   :  { %v1213_v59 = vpop.f32.mrf.mxu2 }
  0xc4   :  { %v1178_v60 = vpop.f32.mrf.mxu0 }
  0xc5   :  { %v1232_v51 = vpop.f32.mrf.mxu3  ;;  %v1179_v14 = vadd.f32 %v1178_v60, %v297_v47 }
  0xc6   :  { %v1197_v61 = vpop.f32.mrf.mxu1 }
  0xc7   :  { %1481 = vmatmul.bf16.gmra.mxu0 %v3015_v40  ;;  %v1198_v20 = vadd.f32 %v1197_v61, %v1179_v14 }
  0xc8   :  { %1519 = vmatmul.bf16.gmra.mxu2 %v3036_v39  ;;  %v1212_v39 = vadd.f32 %v1211_v48, %v1193_v5 }
  0xc9   :  { %1500 = vmatmul.bf16.gmra.mxu1 %v3019_v44  ;;  %v1214_v44 = vadd.f32 %v1213_v59, %v1195_v7 }
  0xca   :  { %1538 = vmatmul.bf16.gmra.mxu3 %v3040_v53  ;;  %v1231_v53 = vadd.f32 %v1230_v54, %v1212_v39 }
  0xcb   :  { %v1216_v37 = vpop.f32.mrf.mxu2  ;;  %v1233_v9 = vadd.f32 %v1232_v51, %v1214_v44  ;;  %v2781_v51 = vld [vmem:[#allocation8 + $0x58] sm:$0xff] }
  0xcc   :  { %v1180_v63 = vpop.f32.mrf.mxu0  ;;  %v1217_v25 = vadd.f32 %v1216_v37, %v1198_v20  ;;  %1800 = vmatpush.bf16.msrb.mxu2 %v2781_v51 }
  0xcd   :  { %v1235_v0 = vpop.f32.mrf.mxu3  ;;  %v1181_v16 = vadd.f32 %v1180_v63, %v297_v47  ;;  %v2780_v47 = vld [vmem:[#allocation8 + $0x50] sm:$0xff] }
  0xce   :  { %v1199_v1 = vpop.f32.mrf.mxu1  ;;  %v1236_v32 = vadd.f32 %v1235_v0, %v1217_v25 }
  0xcf   :  { %v1200_v26 = vadd.f32 %v1199_v1, %v1181_v16 }
  0xd0   :  { %1801 = vmatpush.bf16.msrb.mxu2 %v2780_v47 }
  0xd3   :  { %v1218_v4 = vpop.f32.mrf.mxu2 }
  0xd4   :  { %v1249_v6 = vpop.f32.mrf.mxu0  ;;  %v1219_v29 = vadd.f32 %v1218_v4, %v1200_v26  ;;  %1802 = vmatpush.bf16.msrb.mxu2 %v2779_v3  ;;  %v2778_v4 = vld [vmem:[#allocation8 + $0x40] sm:$0xff] }
  0xd5   :  { %v1237_v40 = vpop.f32.mrf.mxu3  ;;  %v1250_v10 = vadd.f32 %v1249_v6, %v1231_v53 }
  0xd6   :  { %v1268_v46 = vpop.f32.mrf.mxu1  ;;  %v1238_v34 = vadd.f32 %v1237_v40, %v1219_v29 }
  0xd7   :  { %2511 = vmatmul.msk.bf16.vlgmr.msrb.gmra.mxu0 %vm1157_vm0, %v3027_v45  ;;  %v1269_v15 = vadd.f32 %v1268_v46, %v1250_v10  ;;  %v298_v46 = vperm.slane %v3072_v55, 1 }
  0xd8   :  { %1803 = vmatpush.bf16.msrb.mxu2 %v2778_v4  ;;  %v2789_v4 = vld [vmem:[#allocation8 + $0x98] sm:$0xff] }
  0xdb   :  { %v1287_v8 = vpop.f32.mrf.mxu2 }
  0xdc   :  { %v1251_v52 = vpop.f32.mrf.mxu0  ;;  %v1288_v17 = vadd.f32 %v1287_v8, %v1269_v15 }
  0xdd   :  { %v3078_v11 = vpop.f32.mrf.mxu3  ;;  %v1252_v13 = vadd.f32 %v1251_v52, %v1233_v9 }
  0xde   :  { %v1270_v12 = vpop.f32.mrf.mxu1  ;;  %v1563_v27 = vmax.f32 %v1288_v17, 0.0  ;;  %v1307_v7 = vadd.f32 %v3078_v11, %v298_v46 }
  0xdf   :  { %v1271_v18 = vadd.f32 %v1270_v12, %v1252_v13 }
  0xe3   :  { %v1289_v19 = vpop.f32.mrf.mxu2 }
  0xe4   :  { %v1290_v21 = vadd.f32 %v1289_v19, %v1271_v18  ;;  %v1254_v22 = vpop.f32.mrf.mxu0 }
  0xe5   :  { %v1308_v45 = vpop.f32.mrf.mxu3  ;;  %v1255_v36 = vadd.f32 %v1254_v22, %v1236_v32 }
  0xe6   :  { %v1273_v23 = vpop.f32.mrf.mxu1  ;;  %v1566_v28 = vmax.f32 %v1290_v21, 0.0  ;;  %v1309_v52 = vadd.f32 %v1308_v45, %v298_v46 }
  0xe7   :  { %2512 = vmatmul.msk.bf16.gmra.mxu0 %vm1157_vm0, %v3038_v50  ;;  %v1274_v48 = vadd.f32 %v1273_v23, %v1255_v36 }
  0xe8   :  { %v1575_v30 = vpack.c.bf16 %v1566_v28, %v1563_v27 }
  0xea   :  { %1785 = vmatmul.bf16.vlgmr.msrb.gmra.mxu1 %v1575_v30 }
  0xeb   :  { %v1292_v33 = vpop.f32.mrf.mxu2 }
  0xec   :  { %v1256_v35 = vpop.f32.mrf.mxu0  ;;  %v1293_v54 = vadd.f32 %v1292_v33, %v1274_v48 }
  0xed   :  { %v1311_v38 = vpop.f32.mrf.mxu3  ;;  %v1257_v41 = vadd.f32 %v1256_v35, %v1238_v34 }
  0xee   :  { %v1275_v42 = vpop.f32.mrf.mxu1  ;;  %v1569_v61 = vmax.f32 %v1293_v54, 0.0  ;;  %v1312_v22 = vadd.f32 %v1311_v38, %v298_v46 }
  0xef   :  { %v1276_v50 = vadd.f32 %v1275_v42, %v1257_v41 }
  0xf3   :  { %v1294_v56 = vpop.f32.mrf.mxu2 }
  0xf4   :  { %v1295_v57 = vadd.f32 %v1294_v56, %v1276_v50  ;;  %v1325_v59 = vpop.f32.mrf.mxu0  ;;  %v2792_v50 = vld [vmem:[#allocation8 + $0xb0] sm:$0xff] }
  0xf5   :  { %v1313_v58 = vpop.f32.mrf.mxu3  ;;  %v1326_v8 = vadd.f32 %v1325_v59, %v1307_v7  ;;  %1816 = vmatpush.bf16.msrb.mxu3 %v2792_v50  ;;  %v2791_v59 = vld [vmem:[#allocation8 + $0xa8] sm:$0xff] }
  0xf6   :  { %v1344_v60 = vpop.f32.mrf.mxu1  ;;  %v1572_v62 = vmax.f32 %v1295_v57, 0.0  ;;  %v1314_v45 = vadd.f32 %v1313_v58, %v298_v46  ;;  %v2787_v46 = vld [vmem:[#allocation8 + $0x88] sm:$0xff] }
  0xf7   :  { %v1345_v12 = vadd.f32 %v1344_v60, %v1326_v8  ;;  %v299_v8 = vperm.slane %v3072_v55, 2 }
  0xf8   :  { %v1578_v37 = vpack.c.bf16 %v1572_v62, %v1569_v61 }
  0xf9   :  { %1817 = vmatpush.bf16.msrb.mxu3 %v2791_v59 }
  0xfa   :  { %1790 = vmatmul.bf16.gmra.mxu1 %v1578_v37 }
  0xfb   :  { %v1363_v63 = vpop.f32.mrf.mxu2 }
  0xfc   :  { %v1327_v0 = vpop.f32.mrf.mxu0  ;;  %v1364_v14 = vadd.f32 %v1363_v63, %v1345_v12  ;;  %v2790_v63 = vld [vmem:[#allocation8 + $0xa0] sm:$0xff] }
  0xfd   :  { %v1382_v1 = vpop.f32.mrf.mxu3  ;;  %v1328_v13 = vadd.f32 %v1327_v0, %v1309_v52  ;;  %1818 = vmatpush.bf16.msrb.mxu3 %v2790_v63 }
  0xfe   :  { %v1346_v2 = vpop.f32.mrf.mxu1  ;;  %v1383_v19 = vadd.f32 %v1382_v1, %v1364_v14 }
  0xff   :  { %v1347_v17 = vadd.f32 %v1346_v2, %v1328_v13 }
 0x101   :  { %1819 = vmatpush.bf16.msrb.mxu3 %v2789_v4 }
 0x103   :  { %v1365_v5 = vpop.f32.mrf.mxu2 }
 0x104   :  { %v1330_v40 = vpop.f32.mrf.mxu0  ;;  %v1366_v20 = vadd.f32 %v1365_v5, %v1347_v17 }
 0x105   :  { %v1384_v6 = vpop.f32.mrf.mxu3  ;;  %v1331_v25 = vadd.f32 %v1330_v40, %v1312_v22 }
 0x106   :  { %v1349_v39 = vpop.f32.mrf.mxu1  ;;  %v1385_v24 = vadd.f32 %v1384_v6, %v1366_v20  ;;  %v2788_v6 = vld [vmem:[#allocation8 + $0x90] sm:$0xff] }
 0x107   :  { %v1350_v31 = vadd.f32 %v1349_v39, %v1331_v25  ;;  %1820 = vmatpush.bf16.msrb.mxu3 %v2788_v6  ;;  %v2816_v6 = vld [vmem:[%s3098_s4] ss:$0 sm:$0xff]  ;;  %s2955_s4 = smov [#allocation10]  }
 0x108   :  { %s1846_s17 = sshll.u32 %s2955_s4, 4  ;;  %s1847_s17 = int_to_ptr.vmem [resolvable:$true] %s1846_s17 }
 0x10b   :  { %v1368_v44 = vpop.f32.mrf.mxu2  ;;  %1821 = vmatpush.bf16.msrb.mxu3 %v2787_v46 }
 0x10c   :  { %v1332_v53 = vpop.f32.mrf.mxu0  ;;  %v1369_v35 = vadd.f32 %v1368_v44, %v1350_v31  ;;  %v2786_v44 = vld [vmem:[#allocation8 + $0x80] sm:$0xff] }
 0x10d   :  { %v1387_v10 = vpop.f32.mrf.mxu3  ;;  %v1333_v32 = vadd.f32 %v1332_v53, %v1314_v45 }
 0x10e   :  { %v1351_v9 = vpop.f32.mrf.mxu1  ;;  %v1388_v49 = vadd.f32 %v1387_v10, %v1369_v35 }
 0x10f   :  { %v1352_v38 = vadd.f32 %v1351_v9, %v1333_v32  ;;  %1822 = vmatpush.bf16.msrb.mxu3 %v2786_v44 }
 0x113   :  { %v1370_v15 = vpop.f32.mrf.mxu2 }
 0x114   :  { %v1401_v16 = vpop.f32.mrf.mxu0  ;;  %v1371_v54 = vadd.f32 %v1370_v15, %v1352_v38 }
 0x115   :  { %v1389_v21 = vpop.f32.mrf.mxu3  ;;  %v1402_v23 = vadd.f32 %v1401_v16, %v1383_v19 }
 0x116   :  { %v1420_v18 = vpop.f32.mrf.mxu1  ;;  %v1390_v58 = vadd.f32 %v1389_v21, %v1371_v54 }
 0x117   :  { %v1421_v26 = vadd.f32 %v1420_v18, %v1402_v23 }
 0x119   :  { %v1564_v33 = vmax.f32 %v1421_v26, 0.0 }
 0x11b   :  { %v1439_v29 = vpop.f32.mrf.mxu2 }
 0x11c   :  { %v1403_v11 = vpop.f32.mrf.mxu0  ;;  %v1440_v12 = vadd.f32 %v1439_v29, %v299_v8 }
 0x11d   :  { %v1404_v27 = vadd.f32 %v1403_v11, %v1385_v24  ;;  %v1458_v36 = vpop.f32.mrf.mxu3 }
 0x11e   :  { %v1422_v28 = vpop.f32.mrf.mxu1  ;;  %v1459_v14 = vadd.f32 %v1458_v36, %v1440_v12 }
 0x11f   :  { %v1423_v30 = vadd.f32 %v1422_v28, %v1404_v27 }
 0x121   :  { %v1567_v34 = vmax.f32 %v1423_v30, 0.0 }
 0x123   :  { %v1576_v42 = vpack.c.bf16 %v1567_v34, %v1564_v33  ;;  %v1441_v56 = vpop.f32.mrf.mxu2 }
 0x124   :  { %v1406_v41 = vpop.f32.mrf.mxu0  ;;  %v1442_v15 = vadd.f32 %v1441_v56, %v299_v8 }
 0x125   :  { %1804 = vmatmul.bf16.vlgmr.msrb.gmra.mxu2 %v1576_v42  ;;  %v1407_v57 = vadd.f32 %v1406_v41, %v1388_v49  ;;  %v1460_v60 = vpop.f32.mrf.mxu3 }
 0x126   :  { %v1425_v48 = vpop.f32.mrf.mxu1  ;;  %v1461_v18 = vadd.f32 %v1460_v60, %v1442_v15 }
 0x127   :  { %v1426_v61 = vadd.f32 %v1425_v48, %v1407_v57 }
 0x129   :  { %v1570_v0 = vmax.f32 %v1426_v61, 0.0 }
 0x12b   :  { %v1444_v2 = vpop.f32.mrf.mxu2 }
 0x12c   :  { %v1408_v51 = vpop.f32.mrf.mxu0  ;;  %v1445_v26 = vadd.f32 %v1444_v2, %v299_v8 }
 0x12d   :  { %v1409_v62 = vadd.f32 %v1408_v51, %v1390_v58  ;;  %v1463_v40 = vpop.f32.mrf.mxu3 }
 0x12e   :  { %v1427_v37 = vpop.f32.mrf.mxu1  ;;  %v1464_v29 = vadd.f32 %v1463_v40, %v1445_v26 }
 0x12f   :  { %v1428_v47 = vadd.f32 %v1427_v37, %v1409_v62 }
 0x131   :  { %v1573_v1 = vmax.f32 %v1428_v47, 0.0 }
 0x133   :  { %v1579_v3 = vpack.c.bf16 %v1573_v1, %v1570_v0  ;;  %v1446_v39 = vpop.f32.mrf.mxu2 }
 0x134   :  { %v1477_v5 = vpop.f32.mrf.mxu0  ;;  %v1447_v30 = vadd.f32 %v1446_v39, %v299_v8 }
 0x135   :  { %1809 = vmatmul.bf16.gmra.mxu2 %v1579_v3  ;;  %v1465_v53 = vpop.f32.mrf.mxu3  ;;  %v1478_v19 = vadd.f32 %v1477_v5, %v1459_v14 }
 0x136   :  { %v1496_v9 = vpop.f32.mrf.mxu1  ;;  %v1466_v35 = vadd.f32 %v1465_v53, %v1447_v30 }
 0x137   :  { %v1497_v22 = vadd.f32 %v1496_v9, %v1478_v19 }
 0x13b   :  { %v1515_v52 = vpop.f32.mrf.mxu2 }
 0x13c   :  { %v1479_v7 = vpop.f32.mrf.mxu0  ;;  %v1516_v11 = vadd.f32 %v1515_v52, %v1497_v22 }
 0x13d   :  { %v1534_v13 = vpop.f32.mrf.mxu3  ;;  %v1480_v21 = vadd.f32 %v1479_v7, %v1461_v18 }
 0x13e   :  { %v1498_v17 = vpop.f32.mrf.mxu1  ;;  %v1535_v28 = vadd.f32 %v1534_v13, %v1516_v11 }
 0x13f   :  { %v1499_v25 = vadd.f32 %v1498_v17, %v1480_v21 }
 0x143   :  { %v1517_v20 = vpop.f32.mrf.mxu2 }
 0x144   :  { %v1482_v10 = vpop.f32.mrf.mxu0  ;;  %v1518_v55 = vadd.f32 %v1517_v20, %v1499_v25 }
 0x145   :  { %v1536_v23 = vpop.f32.mrf.mxu3  ;;  %v1483_v42 = vadd.f32 %v1482_v10, %v1464_v29 }
 0x146   :  { %v1501_v27 = vpop.f32.mrf.mxu1  ;;  %v1537_v31 = vadd.f32 %v1536_v23, %v1518_v55 }
 0x147   :  { %v1502_v54 = vadd.f32 %v1501_v27, %v1483_v42 }
 0x14b   :  { %v1520_v45 = vpop.f32.mrf.mxu2 }
 0x14c   :  { %v1484_v16 = vpop.f32.mrf.mxu0  ;;  %v1521_v57 = vadd.f32 %v1520_v45, %v1502_v54 }
 0x14d   :  { %v1539_v36 = vpop.f32.mrf.mxu3  ;;  %v1485_v38 = vadd.f32 %v1484_v16, %v1466_v35 }
 0x14e   :  { %v1503_v49 = vpop.f32.mrf.mxu1  ;;  %v1540_v51 = vadd.f32 %v1539_v36, %v1521_v57 }
 0x14f   :  { %v1504_v58 = vadd.f32 %v1503_v49, %v1485_v38 }
 0x153   :  { %v1522_v50 = vpop.f32.mrf.mxu2 }
 0x154   :  { %v1553_v24 = vpop.f32.mrf.mxu0  ;;  %v1523_v59 = vadd.f32 %v1522_v50, %v1504_v58 }
 0x155   :  { %v1554_v32 = vadd.f32 %v1553_v24, %v1535_v28  ;;  %v1541_v60 = vpop.f32.mrf.mxu3 }
 0x156   :  { %v1542_v61 = vadd.f32 %v1541_v60, %v1523_v59 }
 0x157   :  { %v1565_v43 = vmax.f32 %v1554_v32, 0.0 }
 0x15c   :  { %v1555_v33 = vpop.f32.mrf.mxu0 }
 0x15d   :  { %v1556_v34 = vadd.f32 %v1555_v33, %v1537_v31 }
 0x15f   :  { %v1568_v41 = vmax.f32 %v1556_v34, 0.0 }
 0x161   :  { %v1577_v48 = vpack.c.bf16 %v1568_v41, %v1565_v43 }
 0x163   :  { %1823 = vmatmul.bf16.vlgmr.msrb.gmra.mxu3 %v1577_v48 }
 0x164   :  { %v1558_v56 = vpop.f32.mrf.mxu0 }
 0x165   :  { %v1559_v62 = vadd.f32 %v1558_v56, %v1540_v51 }
 0x167   :  { %v1571_v63 = vmax.f32 %v1559_v62, 0.0  ;;  %v1786_v2 = vpop.f32.mrf.mxu1 }
 0x168   :  { %v1787_v46 = vadd.f32 %v2816_v6, %v1786_v2 }
 0x16c   :  { %v1560_v37 = vpop.f32.mrf.mxu0 }
 0x16d   :  { %v1561_v47 = vadd.f32 %v1560_v37, %v1542_v61 }
 0x16f   :  { %v1574_v0 = vmax.f32 %v1561_v47, 0.0  ;;  %v1788_v4 = vpop.f32.mrf.mxu1 }
 0x170   :  { %v1789_v39 = vadd.f32 %v2816_v6, %v1788_v4 }
 0x171   :  { %v1580_v1 = vpack.c.bf16 %v1574_v0, %v1571_v63 }
 0x173   :  { %1828 = vmatmul.bf16.gmra.mxu3 %v1580_v1 }
 0x177   :  { %v1791_v53 = vpop.f32.mrf.mxu1 }
 0x178   :  { %v1792_v16 = vadd.f32 %v2816_v6, %v1791_v53 }
 0x17f   :  { %v1793_v14 = vpop.f32.mrf.mxu1 }
 0x180   :  { %v1794_v17 = vadd.f32 %v2816_v6, %v1793_v14 }
 0x1a8   :  { %v1805_v3 = vpop.f32.mrf.mxu2 }
 0x1a9   :  { %v1806_v7 = vadd.f32 %v1805_v3, %v1787_v46 }
 0x1b0   :  { %v1807_v5 = vpop.f32.mrf.mxu2 }
 0x1b1   :  { %v1808_v44 = vadd.f32 %v1807_v5, %v1789_v39 }
 0x1b8   :  { %v1810_v52 = vpop.f32.mrf.mxu2 }
 0x1b9   :  { %v1811_v18 = vadd.f32 %v1810_v52, %v1792_v16 }
 0x1c0   :  { %v1812_v15 = vpop.f32.mrf.mxu2 }
 0x1c1   :  { %v1813_v19 = vadd.f32 %v1812_v15, %v1794_v17 }
 0x1e6   :  { %v1824_v40 = vpop.f32.mrf.mxu3 }
 0x1e7   :  { %v1825_v9 = vadd.f32 %v1824_v40, %v1806_v7 }
 0x1ee   :  { %v1826_v8 = vpop.f32.mrf.mxu3 }
 0x1ef   :  { %v1827_v10 = vadd.f32 %v1826_v8, %v1808_v44 }
 0x1f1   :  { %v2797_v12 = vpack.c.bf16 %v1827_v10, %v1825_v9 }
 0x1f3   :  { %2798 = vst [vmem:[#allocation10] sm:$0xff] %v2797_v12  }
 0x1f6   :  { %v1829_v13 = vpop.f32.mrf.mxu3 }
 0x1f7   :  { %v1830_v21 = vadd.f32 %v1829_v13, %v1811_v18 }
 0x1fe   :  { %v1831_v20 = vpop.f32.mrf.mxu3 }
 0x1ff   :  { %v1832_v22 = vadd.f32 %v1831_v20, %v1813_v19 }
 0x201   :  { %v2802_v23 = vpack.c.bf16 %v1832_v22, %v1830_v21 }
 0x203   :  { %2804 = vst [vmem:[#allocation10 + $0x8] sm:$0xff] %v2802_v23  }
 0x204   :  { %1854 = dma.vmem_to_hbm [thread:$0]  %s1847_s17, 256, %s1849_s20, [#allocation4], %s2953_s15, %s2953_s15, %s2954_s16  }
 0x205   :  { %2943 = dma.done.wait [#allocation4], 256  }
 0x206   :  { %2944 = vsyncadd [#allocation4], 4294967040 }
 0x207   :  { %1859 = vsyncpa [#allocation3], 1 }
 0x208   :  { %1860 = vsyncpa [#allocation6], 1 }
 0x209   :  { %1861 = vsyncpa [#allocation9], 1 }
 0x20a   :  { %1862 = vsyncpa [#allocation4], 1 }

</bundles_post_ra>
